<compile_context>
chip_gen: v5e
topology: v5e:2x2
jax: 0.10.0
libtpu: 0.0.40
codegen_flags: <defaults>
</compile_context>

<pallas_src>
import math

import jax
import jax.numpy as jnp
from jax import lax
from jax.experimental import pallas as pl
from jax.experimental.pallas import tpu as pltpu


def _head_kernel(x1_ref, x2_ref, mask_ref, wp1_ref, wp2_ref, bp_ref,
                 wa_ref, ba_ref, wr_ref, br_ref, out_ref):
    # x1   : (TB, S, H) bf16  hidden_states[-2] batch tile
    # x2   : (TB, S, H) bf16  hidden_states[-1] batch tile
    # mask : (TB, S)    f32   attention mask (1.0 = keep, 0.0 = pad)
    # wp1  : (H, H)     bf16  proj weight rows for x1 (first half of the 2H input dim)
    # wp2  : (H, H)     bf16  proj weight rows for x2 (second half)
    # bp   : (1, H)     f32   proj bias
    # wa   : (1, H)     f32   attention scoring weight (lane-dense row)
    # ba   : (1, 1)     f32   attention scoring bias   (SMEM scalar)
    # wr   : (1, H)     f32   regression weight (lane-dense row)
    # br   : (1, 1)     f32   regression bias          (SMEM scalar)
    TB, S, H = x1_ref.shape
    inv_scaling = 1.0 / math.sqrt(H)

    x1 = x1_ref[...].reshape(TB * S, H)               # bf16
    x2 = x2_ref[...].reshape(TB * S, H)               # bf16
    mask = mask_ref[...]                              # (TB, S) f32
    wp1 = wp1_ref[...]                                # (H, H) bf16
    wp2 = wp2_ref[...]                                # (H, H) bf16
    bp = bp_ref[...]                                  # (1, H) f32
    wa = wa_ref[...]                                  # (1, H) f32
    wr = wr_ref[...]                                  # (1, H) f32
    ba = ba_ref[0, 0]                                 # f32 scalar (SMEM)
    br = br_ref[0, 0]                                 # f32 scalar (SMEM)

    # proj: Linear(2H -> H) on every token, with the feature-concat fused into two H->H
    # matmuls accumulated in f32 (MXU, bf16 operands).
    xp2 = jnp.dot(x1, wp1, preferred_element_type=jnp.float32)
    xp2 = xp2 + jnp.dot(x2, wp2, preferred_element_type=jnp.float32)     # (TB*S, H) f32
    xp = (xp2 + bp).reshape(TB, S, H)                 # bias broadcast materialized once per tile

    # attention scores: Linear(H -> 1) as VPU multiply + XLU lane reduce
    # (avoids an N=1 MXU matmul and its lane-width-1 output layout).
    scores = jnp.sum(xp * wa[None, :, :], axis=-1) + ba                   # (TB, S) f32
    scores = scores * inv_scaling

    # additive mask, matching torch.finfo(torch.float32).min masking
    scores = scores + (1.0 - mask) * jnp.finfo(jnp.float32).min

    # softmax over the sequence axis; normalization via EUP approximate reciprocal
    m = jnp.max(scores, axis=1, keepdims=True)                            # (TB, 1)
    e = jnp.exp(scores - m)                                               # (TB, S)
    inv_denom = pl.reciprocal(jnp.sum(e, axis=1, keepdims=True), approx=True)
    attn = e * inv_denom                                                  # (TB, S)

    # weighted sum over the sequence
    pooled = jnp.sum(attn[:, :, None] * xp, axis=1)                       # (TB, H) f32

    # exact (erf-based) GELU, matching torch.nn.functional.gelu default
    g = 0.5 * pooled * (1.0 + lax.erf(pooled * (1.0 / math.sqrt(2.0))))

    # regression head: Linear(H -> 1) as VPU multiply + lane reduce
    logits = jnp.sum(g * wr, axis=-1, keepdims=True) + br                 # (TB, 1)
    out_ref[...] = logits


def house_price_head(h_prev, h_last, attn_mask, wp, bp, wa, ba, wr, br, *,
                     batch_tile=8, vmem_limit_bytes=32 * 1024 * 1024):
    """h_prev, h_last: (B, S, H) f32 (hidden_states[-2], hidden_states[-1]);
    attn_mask: (B, S); wp: (2H, H); returns logits (B, 1) f32."""
    B, S, H = h_prev.shape

    # Batch tile: multiple of 8 (sublane-aligned) when it divides B, so the 2-D mask / output
    # blocks are layout-legal; otherwise fall back to a single batch block (tiny batches).
    tb = batch_tile
    if B % tb != 0 or tb % 8 != 0:
        tb = B
    grid = (B // tb,)

    # bf16 on the big operands (halves HBM traffic, full-rate MXU); f32 elementwise math.
    x1 = h_prev.astype(jnp.bfloat16)
    x2 = h_last.astype(jnp.bfloat16)
    wp1 = wp[:H, :].astype(jnp.bfloat16)              # proj weight rows acting on h_prev
    wp2 = wp[H:, :].astype(jnp.bfloat16)              # proj weight rows acting on h_last
    bp_row = bp.reshape(1, H).astype(jnp.float32)
    wa_row = wa.reshape(1, H).astype(jnp.float32)     # lane-dense row instead of (H, 1) column
    wr_row = wr.reshape(1, H).astype(jnp.float32)
    ba_s = ba.reshape(1, 1).astype(jnp.float32)
    br_s = br.reshape(1, 1).astype(jnp.float32)
    mask_f32 = attn_mask.astype(jnp.float32)

    vmem = pltpu.MemorySpace.VMEM
    smem = pltpu.MemorySpace.SMEM
    in_specs = [
        pl.BlockSpec((tb, S, H), lambda i: (i, 0, 0), memory_space=vmem),  # x1 tile (pipelined)
        pl.BlockSpec((tb, S, H), lambda i: (i, 0, 0), memory_space=vmem),  # x2 tile (pipelined)
        pl.BlockSpec((tb, S), lambda i: (i, 0), memory_space=vmem),        # mask tile
        pl.BlockSpec((H, H), lambda i: (0, 0), memory_space=vmem),         # wp1 (resident)
        pl.BlockSpec((H, H), lambda i: (0, 0), memory_space=vmem),         # wp2 (resident)
        pl.BlockSpec((1, H), lambda i: (0, 0), memory_space=vmem),         # bp (resident)
        pl.BlockSpec((1, H), lambda i: (0, 0), memory_space=vmem),         # wa row (resident)
        pl.BlockSpec(memory_space=smem),                                   # ba scalar
        pl.BlockSpec((1, H), lambda i: (0, 0), memory_space=vmem),         # wr row (resident)
        pl.BlockSpec(memory_space=smem),                                   # br scalar
    ]
    out_spec = pl.BlockSpec((tb, 1), lambda i: (i, 0), memory_space=vmem)

    return pl.pallas_call(
        _head_kernel,
        out_shape=jax.ShapeDtypeStruct((B, 1), jnp.float32),
        grid=grid,
        in_specs=in_specs,
        out_specs=out_spec,
        compiler_params=pltpu.CompilerParams(
            dimension_semantics=("parallel",),   # batch axis shards across TCs on v7x
            vmem_limit_bytes=vmem_limit_bytes,
        ),
    )(x1, x2, mask_f32, wp1, wp2, bp_row, wa_row, ba_s, wr_row, br_s)


def _reference(h_prev, h_last, attn_mask, wp, bp, wa, ba, wr, br):
    """Pure-JAX reference mirroring the kernel's bf16 matmul inputs (f32 accumulation)."""
    H = h_prev.shape[-1]
    x_cat = jnp.concatenate([h_prev, h_last], axis=-1).astype(jnp.bfloat16)
    wp_bf = wp.astype(jnp.bfloat16)
    xp = jnp.einsum("bsd,dh->bsh", x_cat, wp_bf,
                    preferred_element_type=jnp.float32) + bp.reshape(1, 1, H)
    scores = jnp.einsum("bsh,h->bs", xp, wa.reshape(H)) + ba.reshape(())
    scores = scores / math.sqrt(H)
    scores = scores + (1.0 - attn_mask) * jnp.finfo(jnp.float32).min
    attn = jax.nn.softmax(scores, axis=1)
    pooled = jnp.sum(attn[:, :, None] * xp, axis=1)
    g = jax.nn.gelu(pooled, approximate=False)
    return jnp.sum(g * wr.reshape(1, H), axis=-1, keepdims=True) + br.reshape(())


if __name__ == "__main__":
    # small shapes (real model: H=768, S~512); B=16 so the batch grid actually tiles (TB=8, grid=2)
    B, S, H = 16, 16, 128

    key = jax.random.PRNGKey(0)
    k_h1, k_h2, k_wp, k_bp, k_wa, k_ba, k_wr, k_br = jax.random.split(key, 8)

    # synthetic "last two hidden states" of the (untranslated) T5 encoder
    h_minus2 = jax.random.normal(k_h1, (B, S, H), jnp.float32)
    h_minus1 = jax.random.normal(k_h2, (B, S, H), jnp.float32)

    # attention mask: varying valid lengths per row (at least S-3 valid tokens)
    lengths = S - (jnp.arange(B) % 4)
    attn_mask = (jnp.arange(S)[None, :] < lengths[:, None]).astype(jnp.float32)  # (B, S)

    # deterministic parameter init (AttentionPooling(H) + regression Linear(H, 1))
    wp = 0.02 * jax.random.normal(k_wp, (2 * H, H), jnp.float32)         # proj.weight^T
    bp = 0.02 * jax.random.normal(k_bp, (1, H), jnp.float32)             # proj.bias
    wa = 0.02 * jax.random.normal(k_wa, (H, 1), jnp.float32)             # attention.weight^T
    ba = 0.02 * jax.random.normal(k_ba, (1, 1), jnp.float32)             # attention.bias
    wr = 0.02 * jax.random.normal(k_wr, (H, 1), jnp.float32)             # regression_fc.weight^T
    br = 0.02 * jax.random.normal(k_br, (1, 1), jnp.float32)             # regression_fc.bias

    logits = house_price_head(h_minus2, h_minus1, attn_mask, wp, bp, wa, ba, wr, br)
    logits = jax.block_until_ready(logits)

    ref = _reference(h_minus2, h_minus1, attn_mask, wp, bp, wa, ba, wr, br)
    assert logits.shape == (B, 1)
    assert jnp.allclose(logits, ref, atol=2e-3, rtol=2e-3), (logits, ref)

    print("KERNEL_OK")
</pallas_src>

<mosaic_0001>
module attributes {stable_mosaic.version = 11 : i64} {
  func.func @_head_kernel(%arg0: i32, %arg1: memref<8x16x128xbf16, #tpu.memory_space<vmem>>, %arg2: memref<8x16x128xbf16, #tpu.memory_space<vmem>>, %arg3: memref<8x16xf32, #tpu.memory_space<vmem>>, %arg4: memref<128x128xbf16, #tpu.memory_space<vmem>>, %arg5: memref<128x128xbf16, #tpu.memory_space<vmem>>, %arg6: memref<1x128xf32, #tpu.memory_space<vmem>>, %arg7: memref<1x128xf32, #tpu.memory_space<vmem>>, %arg8: memref<1x1xf32, #tpu.memory_space<smem>>, %arg9: memref<1x128xf32, #tpu.memory_space<vmem>>, %arg10: memref<1x1xf32, #tpu.memory_space<smem>>, %arg11: memref<8x1xf32, #tpu.memory_space<vmem>>) attributes {dimension_semantics = [#tpu.dimension_semantics<parallel>], iteration_bounds = array<i64: 2>, scalar_prefetch = 0 : i64, scratch_operands = 0 : i64, tpu.core_type = #tpu.core_type<tc>, window_params = [{transform_indices = @transform_0, window_bounds = array<i64: 8, 16, 128>}, {transform_indices = @transform_1, window_bounds = array<i64: 8, 16, 128>}, {transform_indices = @transform_2, window_bounds = array<i64: 8, 16>}, {pipeline_mode = #tpu.pipeline_mode<synchronous>, transform_indices = @transform_3, window_bounds = array<i64: 128, 128>}, {pipeline_mode = #tpu.pipeline_mode<synchronous>, transform_indices = @transform_4, window_bounds = array<i64: 128, 128>}, {pipeline_mode = #tpu.pipeline_mode<synchronous>, transform_indices = @transform_5, window_bounds = array<i64: 1, 128>}, {pipeline_mode = #tpu.pipeline_mode<synchronous>, transform_indices = @transform_6, window_bounds = array<i64: 1, 128>}, {transform_indices = @transform_7, window_bounds = array<i64: 1, 1>}, {pipeline_mode = #tpu.pipeline_mode<synchronous>, transform_indices = @transform_8, window_bounds = array<i64: 1, 128>}, {transform_indices = @transform_9, window_bounds = array<i64: 1, 1>}, {transform_indices = @transform_10, window_bounds = array<i64: 8, 1>}]} {
    %c0 = arith.constant 0 : index
    %c0_0 = arith.constant 0 : index
    %c0_1 = arith.constant 0 : index
    %0 = vector.load %arg1[%c0, %c0_0, %c0_1] : memref<8x16x128xbf16, #tpu.memory_space<vmem>>, vector<8x16x128xbf16>
    %1 = vector.shape_cast %0 : vector<8x16x128xbf16> to vector<128x128xbf16>
    %c0_2 = arith.constant 0 : index
    %c0_3 = arith.constant 0 : index
    %c0_4 = arith.constant 0 : index
    %2 = vector.load %arg2[%c0_2, %c0_3, %c0_4] : memref<8x16x128xbf16, #tpu.memory_space<vmem>>, vector<8x16x128xbf16>
    %3 = vector.shape_cast %2 : vector<8x16x128xbf16> to vector<128x128xbf16>
    %c0_5 = arith.constant 0 : index
    %c0_6 = arith.constant 0 : index
    %4 = vector.load %arg3[%c0_5, %c0_6] : memref<8x16xf32, #tpu.memory_space<vmem>>, vector<8x16xf32>
    %c0_7 = arith.constant 0 : index
    %c0_8 = arith.constant 0 : index
    %5 = vector.load %arg4[%c0_7, %c0_8] : memref<128x128xbf16, #tpu.memory_space<vmem>>, vector<128x128xbf16>
    %c0_9 = arith.constant 0 : index
    %c0_10 = arith.constant 0 : index
    %6 = vector.load %arg5[%c0_9, %c0_10] : memref<128x128xbf16, #tpu.memory_space<vmem>>, vector<128x128xbf16>
    %c0_11 = arith.constant 0 : index
    %c0_12 = arith.constant 0 : index
    %7 = vector.load %arg6[%c0_11, %c0_12] : memref<1x128xf32, #tpu.memory_space<vmem>>, vector<1x128xf32>
    %c0_13 = arith.constant 0 : index
    %c0_14 = arith.constant 0 : index
    %8 = vector.load %arg7[%c0_13, %c0_14] : memref<1x128xf32, #tpu.memory_space<vmem>>, vector<1x128xf32>
    %c0_15 = arith.constant 0 : index
    %c0_16 = arith.constant 0 : index
    %9 = vector.load %arg9[%c0_15, %c0_16] : memref<1x128xf32, #tpu.memory_space<vmem>>, vector<1x128xf32>
    %c0_17 = arith.constant 0 : index
    %c0_18 = arith.constant 0 : index
    %10 = memref.load %arg8[%c0_17, %c0_18] : memref<1x1xf32, #tpu.memory_space<smem>>
    %c0_19 = arith.constant 0 : index
    %c0_20 = arith.constant 0 : index
    %11 = memref.load %arg10[%c0_19, %c0_20] : memref<1x1xf32, #tpu.memory_space<smem>>
    %cst = arith.constant dense<0.000000e+00> : vector<128x128xf32>
    %12 = tpu.matmul %1, %5, %cst {dimension_numbers = #tpu.dot_dimension_numbers<[1], [0], [0], [1], [0, 0, 1, 1], [], []>} : vector<128x128xbf16>, vector<128x128xbf16>, vector<128x128xf32> -> vector<128x128xf32>
    %cst_21 = arith.constant dense<0.000000e+00> : vector<128x128xf32>
    %13 = tpu.matmul %3, %6, %cst_21 {dimension_numbers = #tpu.dot_dimension_numbers<[1], [0], [0], [1], [0, 0, 1, 1], [], []>} : vector<128x128xbf16>, vector<128x128xbf16>, vector<128x128xf32> -> vector<128x128xf32>
    %14 = arith.addf %12, %13 : vector<128x128xf32>
    %15 = vector.broadcast %7 : vector<1x128xf32> to vector<128x128xf32>
    %16 = arith.addf %14, %15 : vector<128x128xf32>
    %17 = vector.shape_cast %16 : vector<128x128xf32> to vector<8x16x128xf32>
    %18 = vector.shape_cast %8 : vector<1x128xf32> to vector<1x1x128xf32>
    %19 = vector.broadcast %18 : vector<1x1x128xf32> to vector<8x16x128xf32>
    %20 = arith.mulf %17, %19 : vector<8x16x128xf32>
    %cst_22 = arith.constant dense<0.000000e+00> : vector<8x16xf32>
    %21 = vector.multi_reduction <add>, %20, %cst_22 [2] : vector<8x16x128xf32> to vector<8x16xf32>
    %22 = vector.broadcast %10 : f32 to vector<8x16xf32>
    %23 = arith.addf %21, %22 : vector<8x16xf32>
    %cst_23 = arith.constant 0.0883883461 : f32
    %24 = vector.broadcast %cst_23 : f32 to vector<8x16xf32>
    %25 = arith.mulf %23, %24 : vector<8x16xf32>
    %cst_24 = arith.constant 1.000000e+00 : f32
    %26 = vector.broadcast %cst_24 : f32 to vector<8x16xf32>
    %27 = arith.subf %26, %4 : vector<8x16xf32>
    %cst_25 = arith.constant -3.40282347E+38 : f32
    %28 = vector.broadcast %cst_25 : f32 to vector<8x16xf32>
    %29 = arith.mulf %27, %28 : vector<8x16xf32>
    %30 = arith.addf %25, %29 : vector<8x16xf32>
    %cst_26 = arith.constant dense<0xFF800000> : vector<8xf32>
    %31 = vector.multi_reduction <maximumf>, %30, %cst_26 [1] : vector<8x16xf32> to vector<8xf32>
    %32 = vector.shape_cast %31 : vector<8xf32> to vector<8x1xf32>
    %33 = vector.broadcast %32 : vector<8x1xf32> to vector<8x16xf32>
    %34 = arith.subf %30, %33 : vector<8x16xf32>
    %35 = math.exp %34 : vector<8x16xf32>
    %cst_27 = arith.constant dense<0.000000e+00> : vector<8xf32>
    %36 = vector.multi_reduction <add>, %35, %cst_27 [1] : vector<8x16xf32> to vector<8xf32>
    %37 = vector.shape_cast %36 : vector<8xf32> to vector<8x1xf32>
    %38 = tpu.reciprocal %37 {approx = true} : vector<8x1xf32> -> vector<8x1xf32>
    %39 = vector.broadcast %38 : vector<8x1xf32> to vector<8x16xf32>
    %40 = arith.mulf %35, %39 : vector<8x16xf32>
    %41 = vector.shape_cast %40 : vector<8x16xf32> to vector<8x16x1xf32>
    %42 = vector.broadcast %41 : vector<8x16x1xf32> to vector<8x16x128xf32>
    %43 = arith.mulf %42, %17 : vector<8x16x128xf32>
    %cst_28 = arith.constant dense<0.000000e+00> : vector<8x128xf32>
    %44 = vector.multi_reduction <add>, %43, %cst_28 [1] : vector<8x16x128xf32> to vector<8x128xf32>
    %cst_29 = arith.constant 5.000000e-01 : f32
    %45 = vector.broadcast %cst_29 : f32 to vector<8x128xf32>
    %46 = arith.mulf %45, %44 : vector<8x128xf32>
    %cst_30 = arith.constant 0.707106769 : f32
    %47 = vector.broadcast %cst_30 : f32 to vector<8x128xf32>
    %48 = arith.mulf %44, %47 : vector<8x128xf32>
    %49 = math.erf %48 : vector<8x128xf32>
    %cst_31 = arith.constant 1.000000e+00 : f32
    %50 = vector.broadcast %cst_31 : f32 to vector<8x128xf32>
    %51 = arith.addf %50, %49 : vector<8x128xf32>
    %52 = arith.mulf %46, %51 : vector<8x128xf32>
    %53 = vector.broadcast %9 : vector<1x128xf32> to vector<8x128xf32>
    %54 = arith.mulf %52, %53 : vector<8x128xf32>
    %cst_32 = arith.constant dense<0.000000e+00> : vector<8xf32>
    %55 = vector.multi_reduction <add>, %54, %cst_32 [1] : vector<8x128xf32> to vector<8xf32>
    %56 = vector.shape_cast %55 : vector<8xf32> to vector<8x1xf32>
    %57 = vector.broadcast %11 : f32 to vector<8x1xf32>
    %58 = arith.addf %56, %57 : vector<8x1xf32>
    %c0_33 = arith.constant 0 : index
    %c0_34 = arith.constant 0 : index
    %59 = vector.load %arg11[%c0_33, %c0_34] : memref<8x1xf32, #tpu.memory_space<vmem>>, vector<8x1xf32>
    tpu.vector_store %arg11[%c0_33, %c0_34], %58 {strides = array<i32>} : memref<8x1xf32, #tpu.memory_space<vmem>>, vector<8x1xf32>,
    return
  }
  func.func @transform_0(%arg0: i32) -> (i32, i32, i32) {
    %c0_i32 = arith.constant 0 : i32
    %c0_i32_0 = arith.constant 0 : i32
    %c0_i32_1 = arith.constant 0 : i32
    return %arg0, %c0_i32, %c0_i32_0 : i32, i32, i32
  }
  func.func @transform_1(%arg0: i32) -> (i32, i32, i32) {
    %c0_i32 = arith.constant 0 : i32
    %c0_i32_0 = arith.constant 0 : i32
    %c0_i32_1 = arith.constant 0 : i32
    return %arg0, %c0_i32, %c0_i32_0 : i32, i32, i32
  }
  func.func @transform_2(%arg0: i32) -> (i32, i32) {
    %c0_i32 = arith.constant 0 : i32
    %c0_i32_0 = arith.constant 0 : i32
    return %arg0, %c0_i32 : i32, i32
  }
  func.func @transform_3(%arg0: i32) -> (i32, i32) {
    %c0_i32 = arith.constant 0 : i32
    %c0_i32_0 = arith.constant 0 : i32
    %c0_i32_1 = arith.constant 0 : i32
    return %c0_i32, %c0_i32_0 : i32, i32
  }
  func.func @transform_4(%arg0: i32) -> (i32, i32) {
    %c0_i32 = arith.constant 0 : i32
    %c0_i32_0 = arith.constant 0 : i32
    %c0_i32_1 = arith.constant 0 : i32
    return %c0_i32, %c0_i32_0 : i32, i32
  }
  func.func @transform_5(%arg0: i32) -> (i32, i32) {
    %c0_i32 = arith.constant 0 : i32
    %c0_i32_0 = arith.constant 0 : i32
    %c0_i32_1 = arith.constant 0 : i32
    return %c0_i32, %c0_i32_0 : i32, i32
  }
  func.func @transform_6(%arg0: i32) -> (i32, i32) {
    %c0_i32 = arith.constant 0 : i32
    %c0_i32_0 = arith.constant 0 : i32
    %c0_i32_1 = arith.constant 0 : i32
    return %c0_i32, %c0_i32_0 : i32, i32
  }
  func.func @transform_7(%arg0: i32) -> (i32, i32) {
    %c0_i32 = arith.constant 0 : i32
    %c0_i32_0 = arith.constant 0 : i32
    %c0_i32_1 = arith.constant 0 : i32
    return %c0_i32, %c0_i32_0 : i32, i32
  }
  func.func @transform_8(%arg0: i32) -> (i32, i32) {
    %c0_i32 = arith.constant 0 : i32
    %c0_i32_0 = arith.constant 0 : i32
    %c0_i32_1 = arith.constant 0 : i32
    return %c0_i32, %c0_i32_0 : i32, i32
  }
  func.func @transform_9(%arg0: i32) -> (i32, i32) {
    %c0_i32 = arith.constant 0 : i32
    %c0_i32_0 = arith.constant 0 : i32
    %c0_i32_1 = arith.constant 0 : i32
    return %c0_i32, %c0_i32_0 : i32, i32
  }
  func.func @transform_10(%arg0: i32) -> (i32, i32) {
    %c0_i32 = arith.constant 0 : i32
    %c0_i32_0 = arith.constant 0 : i32
    return %arg0, %c0_i32 : i32, i32
  }
}

</mosaic_0001>

<bundles_post_ra>
// kernel: tpu_custom_call.1
= control target key start
LH: loop header
LB: loop body
LE: loop exit
PB: predicated region body
PF: predicated region fallthrough
CT: control target
= control target key end

     0   :  { %s3621_s0 = inlined_call_operand.hbm [shape: bf16[16,16,128], index: 0, kind: input, shape index: {}]   ;;  %s3622_s1 = inlined_call_operand.hbm [shape: bf16[16,16,128], index: 1, kind: input, shape index: {}]   ;;  %s3623_s2 = inlined_call_operand.hbm [shape: f32[16,16], index: 2, kind: input, shape index: {}]   ;;  %s3624_s3 = inlined_call_operand.hbm [shape: bf16[128,128], index: 3, kind: input, shape index: {}]   ;;  %s3625_s4 = inlined_call_operand.hbm [shape: bf16[128,128], index: 4, kind: input, shape index: {}]   ;;  %s3626_s5 = inlined_call_operand.vmem [shape: f32[1,128], index: 5, kind: input, shape index: {}]   ;;  %s3627_s6 = inlined_call_operand.vmem [shape: f32[1,128], index: 6, kind: input, shape index: {}]   ;;  %s3628_s7 = inlined_call_operand.<no memory space> [shape: f32[1,1], index: 7, kind: input, shape index: {}]   ;;  %s3629_s8 = inlined_call_operand.vmem [shape: f32[1,128], index: 8, kind: input, shape index: {}]   ;;  %s3630_s9 = inlined_call_operand.<no memory space> [shape: f32[1,1], index: 9, kind: input, shape index: {}]   ;;  %s3631_s10 = inlined_call_operand.vmem [shape: f32[16,1], index: 10, kind: output, shape index: {}]  }
   0x1   :  { %3639 = sst [smem:[#allocation17_spill]] %s3622_s1 }
   0x2   :  { %3640 = sst [smem:[#allocation18_spill]] %s3624_s3 }
   0x3   :  { %3641 = sst [smem:[#allocation19_spill]] %s3625_s4 }
   0x4   :  { %15 = sst [smem:[#allocation2]] %s3628_s7 }
   0x5   :  { %16 = sst [smem:[#allocation3]] %s3630_s9 }
   0x6   :  { %17 = vsyncpa [#allocation5], 0 }
   0x7   :  { %19 = vsyncpa [#allocation5 + $0x1], 0 }
   0x8   :  { %20 = vsyncpa [#allocation7], 0 }
   0x9   :  { %22 = vsyncpa [#allocation7 + $0x1], 0 }
   0xa   :  { %23 = vsyncpa [#allocation10], 0  ;;  %s2687_s17 = smov 0   ;;  %s2689_s18 = smov 0  }
   0xb   :  { %s2691_s19 = smov 0   ;;  %s2693_s20 = smov 0  }
   0xc LB: > { %3642 = sst [smem:[#allocation15_spill]] %s2615_s19  ;;  %s2706_s7 = sadd.s32 4294967295, %s2619_s20   ;;  %s2619_s20 = sphi %s2693_s20, %s3679_s20   ;;  %s2615_s19 = sphi %s2691_s19, %s3676_s19   ;;  %s2611_s18 = sphi %s2689_s18, %s3678_s18   ;;  %s2607_s17 = sphi %s2687_s17, %s3677_s17  }
   0xd   : > { %p49_p0 = scmp.ne.s32.totalorder %s2611_s18, %s2607_s17  ;;  %p50_p1 = scmp.eq.s32.totalorder %s2706_s7, 0 }
   0xe   : > { %p2080_p2 = scmp.ge.s32.totalorder %s2619_s20, 1  ;;  %p285_p3 = scmp.lt.s32.totalorder %s2619_s20, 3 }
   0xf   : > { %p2714_p4 = por %p50_p1, %p49_p0  ;;  %s3644_s3 = sld [smem:[#allocation18_spill]] }
  0x10   : > { %p2721_p5 = pnand %p2080_p2, %p285_p3  ;;  %s2621_s25 = smov [#allocation9]  }
  0x11   : > { %s298_s26 = sshll.u32 %s2621_s25, 4  ;;  %s2734_s28 = sadd.s32 1, %s2619_s20   ;;  %s299_s26 = int_to_ptr.vmem [resolvable:$true] %s298_s26 }
  0x12   : > { %p2305_p6 = pneg %p2721_p5  ;;  %s3632_s29 = smov 64  }
  0x13   : > { %s3634_s30 = smov 4   ;;  %s33_s11 = ssub.s32 %s2619_s20, %s2734_s28 }
  0x14   : > { %p2729_p7 = pnand %p2305_p6, %p50_p1  ;;  %s36_s12 = sadd.s32 1, %s2615_s19 }
  0x15   : > { %s296_s23 = sshll.u32 %s3644_s3, 4  ;;  %p34_p8 = scmp.eq.s32.totalorder %s33_s11, 0  ;;  %s297_s23 = int_to_ptr.hbm [resolvable:$true] %s296_s23 }
  0x16   : > { %2308 = dma.hbm_to_vmem [thread:$0]  (!%p2729_p7), %s297_s23, 1024, %s299_s26, [#allocation10], %s3632_s29, %s3632_s29, %s3634_s30  }
  0x17   : > { %p43_p9 = scmp.ne.s32.totalorder %s2615_s19, %s2611_s18  ;;  %p44_p10 = scmp.eq.s32.totalorder %s2619_s20, 0 }
  0x18   : > { %p2324_p11 = scmp.lt.s32.totalorder %s2619_s20, 2  ;;  %s2752_s14 = sand.u32 1, %s2615_s19  }
  0x19   : > { %s2749_s13 = scalar_select %p34_p8, %s2615_s19, %s36_s12  }
  0x1a   : > { %p45_p12 = por %p44_p10, %p43_p9  ;;  %s3636_s15 = sshll.u32 %s2752_s14, 6 }
  0x1b   : > { %3647 = sst [smem:[#allocation16_spill]] %s2749_s13  ;;  %s3637_s16 = sshll.u32 %s2619_s20, 6 }
  0x1c   : > { %p2756_p13 = pnand %p2324_p11, %p45_p12  ;;  %s364_s21 = sand.u32 1, %s2619_s20  }
  0x1d   : > { %s3649_s1 = sld [smem:[#allocation17_spill]]  ;;  %s368_s11 = scalar_lea.vmem [#allocation6], %s3636_s15 }
  0x1e   : > { %s377_s12 = sshll.u32 %s368_s11, 4  ;;  %s2768_s29 = scalar_lea.sflag [#allocation7], %s364_s21  ;;  %s378_s12 = int_to_ptr.vmem [resolvable:$true] %s377_s12 }
  0x1f   : > { %p2461_p2 = pneg %p2756_p13 }
  0x23   : > { %s374_s25 = scalar_lea.hbm %s3649_s1, %s3637_s16 }
  0x24   : > { %s375_s26 = sshll.u32 %s374_s25, 4  ;;  %s2464_s25 = scalar_lea.hbm %s3649_s1, 128  ;;  %s376_s26 = int_to_ptr.hbm [resolvable:$true] %s375_s26 }
  0x25   : > { %s2457_s30 = sshra.s32 %s376_s26, 4  ;;  %s2458_s30 = int_to_ptr.hbm [resolvable:$true] %s2457_s30 }
  0x26   : > { %s2459_s3 = scalar_lea.hbm %s2458_s30, 64  ;;  %p2465_p8 = scmp.lt.s32.totalorder %s2458_s30, %s3649_s1 }
  0x27   : > { %p2460_p0 = scmp.ne.s32.totalorder %s2458_s30, %s2459_s3  ;;  %p2466_p9 = scmp.lt.s32.totalorder %s2464_s25, %s2459_s3 }
  0x29   : > { %p2462_p3 = pnand %p2461_p2, %p2460_p0  ;;  %p2467_p10 = por %p2466_p9, %p2465_p8 }
  0x2b   : > { %p2463_p6 = pneg %p2462_p3 }
  0x2d   : > { %p2468_p11 = pnand %p2467_p10, %p2463_p6 }
  0x2f   : > { %2471 = shalt.err (!%p2468_p11)
}
  0x30   : > { %s3650_s21 = smov 4   ;;  %s3651_s16 = smov 64  }
  0x31   : > { %2318 = dma.hbm_to_vmem [thread:$0]  (!%p2756_p13), %s376_s26, 1024, %s378_s12, %s2768_s29, %s3651_s16, %s3651_s16, %s3650_s21  }
  0x32   : > { %s3652_s4 = sld [smem:[#allocation19_spill]]  ;;  %s2624_s3 = smov [#allocation11]  }
  0x33   : > { %s312_s30 = sshll.u32 %s2624_s3, 4  ;;  %s3653_s25 = sshll.u32 %s2619_s20, 6  ;;  %s313_s30 = int_to_ptr.vmem [resolvable:$true] %s312_s30 }
  0x34   : > { %s351_s13 = scalar_lea.hbm %s3621_s0, %s3653_s25  ;;  %s3654_s12 = sshll.u32 %s2752_s14, 6 }
  0x35   : > { %s352_s26 = sshll.u32 %s351_s13, 4  ;;  %s345_s19 = scalar_lea.vmem [#allocation4], %s3654_s12  ;;  %s353_s26 = int_to_ptr.hbm [resolvable:$true] %s352_s26 }
  0x36   : > { %s354_s22 = sshll.u32 %s345_s19, 4  ;;  %s342_s23 = scalar_lea.sflag [#allocation5], %s2752_s14  ;;  %s355_s22 = int_to_ptr.vmem [resolvable:$true] %s354_s22 }
  0x37   : > { %s2524_s1 = scalar_lea.hbm %s3621_s0, 128 }
  0x38   : > { %s310_s15 = sshll.u32 %s3652_s4, 4  ;;  %s2517_s4 = sshra.s32 %s353_s26, 4  ;;  %s311_s15 = int_to_ptr.hbm [resolvable:$true] %s310_s15  ;;  %s2518_s4 = int_to_ptr.hbm [resolvable:$true] %s2517_s4 }
  0x39   : > { %2311 = dma.hbm_to_vmem [thread:$0]  (!%p2729_p7), %s311_s15, 1024, %s313_s30, [#allocation10], %s3651_s16, %s3651_s16, %s3650_s21  }
  0x3a   : > { %s2519_s3 = scalar_lea.hbm %s2518_s4, 64  ;;  %p2525_p3 = scmp.lt.s32.totalorder %s2518_s4, %s3621_s0 }
  0x3b   : > { %p2520_p12 = scmp.ne.s32.totalorder %s2518_s4, %s2519_s3  ;;  %p2526_p6 = scmp.lt.s32.totalorder %s2524_s1, %s2519_s3 }
  0x3d   : > { %p2522_p0 = pnand %p2520_p12, %p2461_p2  ;;  %p2527_p8 = por %p2526_p6, %p2525_p3 }
  0x3f   : > { %p2523_p7 = pneg %p2522_p0 }
  0x41   : > { %p2528_p9 = pnand %p2527_p8, %p2523_p7 }
  0x43   : > { %2531 = shalt.err (!%p2528_p9)
}
  0x44   : > { %2315 = dma.hbm_to_vmem [thread:$0]  (!%p2756_p13), %s353_s26, 1024, %s355_s22, %s342_s23, %s3651_s16, %s3651_s16, %s3650_s21  }
  0x45   : > { %s2092_s19 = sshll.u32 %s2752_s14, 3  ;;  %s2093_s25 = sshll.u32 %s2619_s20, 3 }
  0x46   : > { %s395_s27 = scalar_lea.hbm %s3623_s2, %s2093_s25  ;;  %s391_s3 = scalar_lea.vmem [#allocation8], %s2092_s19 }
  0x47   : > { %s397_s4 = sshll.u32 %s395_s27, 4  ;;  %s399_s15 = sshll.u32 %s391_s3, 4  ;;  %s398_s4 = int_to_ptr.hbm [resolvable:$true] %s397_s4  ;;  %s400_s15 = int_to_ptr.vmem [resolvable:$true] %s399_s15 }
  0x48   : > { %s2547_s1 = sshra.s32 %s398_s4, 4  ;;  %s2554_s20 = scalar_lea.hbm %s3623_s2, 16  ;;  %s2548_s1 = int_to_ptr.hbm [resolvable:$true] %s2547_s1 }
  0x49   : > { %s2549_s30 = scalar_lea.hbm %s2548_s1, 8  ;;  %p2555_p0 = scmp.lt.s32.totalorder %s2548_s1, %s3623_s2 }
  0x4a   : > { %p2550_p10 = scmp.ne.s32.totalorder %s2548_s1, %s2549_s30  ;;  %p2556_p7 = scmp.lt.s32.totalorder %s2554_s20, %s2549_s30 }
  0x4c   : > { %p2552_p11 = pnand %p2550_p10, %p2461_p2  ;;  %p2557_p3 = por %p2556_p7, %p2555_p0 }
  0x4e   : > { %p2553_p12 = pneg %p2552_p11 }
  0x50   : > { %p2558_p6 = pnand %p2557_p3, %p2553_p12 }
  0x52   : > { %2561 = shalt.err (!%p2558_p6)
}
  0x53   : > { %2321 = dma.hbm_to_vmem [thread:$0]  (!%p2756_p13), %s398_s4, 128, %s400_s15, %s2768_s29  }
  0x54   : > { %408 = sbr.rel (%p2721_p5) target bundleno = 1376 (0x560), region = 60  ;;  %s410_s22 = sand.u32 (!%p2721_p5), 1, %s2611_s18  }
  0x55   : > { %s2095_s23 = sshll.u32 (!%p2721_p5), %s410_s22, 6  ;;  %s411_s13 = scalar_lea.sflag (!%p2721_p5), [#allocation5], %s410_s22 }
  0x56   : > { %s2837_s19 = scalar_lea.vmem (!%p2721_p5), [#allocation4], %s2095_s23 }
  0x59   : > { %2594 = dma.done.wait (%p2714_p4), %s411_s13, 1024  }
  0x5a   : > { %2596 = vsyncadd (%p2714_p4), %s411_s13, 4294966272  ;;  %s420_s17 = sand.u32 1, %s2706_s7   ;;  %s2844_s29 = scalar_lea.vmem [#allocation6], %s2095_s23 }
  0x5b   : > { %s421_s25 = scalar_lea.sflag [#allocation7], %s420_s17 }
  0x5c   : > { %2598 = dma.done.wait (%p2714_p4), %s421_s25, 1152  }
  0x5d   : > { %2600 = vsyncadd (%p2714_p4), %s421_s25, 4294966144  ;;  %s2097_s24 = sshll.u32 %s410_s22, 3 }
  0x5e   : > { %s2850_s11 = scalar_lea.vmem [#allocation8], %s2097_s24 }
  0x5f   : > { %2602 = dma.done.wait (%p50_p1), [#allocation10], 2048  }
  0x60   : > { %2604 = vsyncadd (%p50_p1), [#allocation10], 4294965248  ;;  %v2274_v0 = vld [vmem:[#allocation11 + $0x38] sm:$0xff]  ;;  %v2273_v2 = vld [vmem:[#allocation11 + $0x30] sm:$0xff]  ;;  %v964_v10 = vlaneseq  ;;  %s565_s3 = sld [smem:[#allocation2]]  ;;  %vm1168_vm0 = vcmask 130112  }
  0x61   : > { %v2266_v1 = vld [vmem:[#allocation9 + $0x38] sm:$0xff]  ;;  %663 = vmatpush.bf16.msra.mxu0 %v2274_v0  ;;  %2275 = vmatpush.bf16.msra.mxu2 %v2274_v0  ;;  %v2265_v3 = vld [vmem:[#allocation9 + $0x30] sm:$0xff]  ;;  %v2272_v4 = vld [vmem:[#allocation11 + $0x28] sm:$0xff]  ;;  %vm1191_vm1 = vcmask 1041409   ;;  %vm1193_vm2 = vcmask 1042434   ;;  %vm1195_vm3 = vcmask 1043459  }
  0x62   : > { %808 = vmatpush.bf16.msra.mxu1 %v2266_v1  ;;  %2283 = vmatpush.bf16.msra.mxu3 %v2266_v1  ;;  %v2264_v5 = vld [vmem:[#allocation9 + $0x28] sm:$0xff]  ;;  %v2271_v6 = vld [vmem:[#allocation11 + $0x20] sm:$0xff]  ;;  %v2270_v8 = vld [vmem:[#allocation11 + $0x18] sm:$0xff]  ;;  %v965_v11 = vshrl.u32 %v964_v10, 7  ;;  %vm1197_vm4 = vcmask 1044484   ;;  %vm1199_vm5 = vcmask 1045509  }
  0x63   : > { %v2263_v7 = vld [vmem:[#allocation9 + $0x20] sm:$0xff]  ;;  %v2262_v9 = vld [vmem:[#allocation9 + $0x18] sm:$0xff]  ;;  %v2269_v12 = vld [vmem:[#allocation11 + $0x10] sm:$0xff]  ;;  %vm1201_vm6 = vcmask 1046534   ;;  %vm1203_vm7 = vcmask 1047559   ;;  %vm1206_vm8 = vcmask 130048  }
  0x64   : > { %v529_v13 = vld [vmem:[%s2850_s11] sm:$0xff]  ;;  %v2858_v15 = vadd.s32 8, %v965_v11  ;;  %2364 = vset.pattern.permute.xlu1 %v965_v11  ;;  %v2268_v18 = vld [vmem:[#allocation11 + $0x8] sm:$0xff]  ;;  %v2267_v21 = vld [vmem:[#allocation11] sm:$0xff]  ;;  %p493_p1 = scmp.lt.s32.totalorder %s2706_s7, 1  ;;  %s566_s30 = sld [smem:[#allocation3]] }
  0x65   : > { %664 = vmatpush.bf16.msra.mxu0 %v2273_v2  ;;  %2276 = vmatpush.bf16.msra.mxu2 %v2273_v2  ;;  %v2261_v14 = vld [vmem:[#allocation9 + $0x10] sm:$0xff]  ;;  %v960_v16 = vsub.f32 1.0, %v529_v13  ;;  %v2260_v19 = vld [vmem:[#allocation9 + $0x8] sm:$0xff]  ;;  %v2259_v22 = vld [vmem:[#allocation9] sm:$0xff] }
  0x66   : > { %809 = vmatpush.bf16.msra.mxu1 %v2265_v3  ;;  %2284 = vmatpush.bf16.msra.mxu3 %v2265_v3  ;;  %v2251_v23 = vld [vmem:[%s2844_s29] sm:$0xff]  ;;  %v2252_v29 = vld [vmem:[%s2844_s29 + $0x8] sm:$0xff]  ;;  %v2253_v35 = vld [vmem:[%s2844_s29 + $0x10] sm:$0xff]  ;;  %s3681_s7 = smov (!%p493_p1, %s2706_s7), 1 }
  0x67   : > { %2365 = vset.pattern.permute.xlu2 %v2858_v15  ;;  %v2861_v17 = vmul.f32 -3.4028235e+38, %v960_v16  ;;  %2366 = vset.pattern.permute.xlu0 %v2858_v15  ;;  %v2255_v24 = vld [vmem:[%s2844_s29 + $0x20] sm:$0xff]  ;;  %v2256_v30 = vld [vmem:[%s2844_s29 + $0x28] sm:$0xff]  ;;  %v2257_v36 = vld [vmem:[%s2844_s29 + $0x30] sm:$0xff]  ;;  %s2100_s16 = sshll.u32 %s3681_s7, 3 }
  0x68   : > { %v2243_v25 = vld [vmem:[%s2837_s19] sm:$0xff]  ;;  %v2244_v31 = vld [vmem:[%s2837_s19 + $0x8] sm:$0xff]  ;;  %v2245_v37 = vld [vmem:[%s2837_s19 + $0x10] sm:$0xff]  ;;  %s496_s21 = scalar_lea.vmem %s3631_s10, %s2100_s16 }
  0x69   : > { %665 = vmatpush.bf16.msra.mxu0 %v2272_v4  ;;  %2277 = vmatpush.bf16.msra.mxu2 %v2272_v4  ;;  %v963_v20 = vperm.slane %v2861_v17, 0  ;;  %v2247_v26 = vld [vmem:[%s2837_s19 + $0x20] sm:$0xff]  ;;  %v976_v27 = vperm.slane %v2861_v17, 1  ;;  %v989_v28 = vperm.slane %v2861_v17, 2  ;;  %v2248_v32 = vld [vmem:[%s2837_s19 + $0x28] sm:$0xff]  ;;  %v1002_v33 = vperm.slane %v2861_v17, 3 }
  0x6a   : > { %810 = vmatpush.bf16.msra.mxu1 %v2264_v5  ;;  %2285 = vmatpush.bf16.msra.mxu3 %v2264_v5  ;;  %v1015_v34 = vperm.slane %v2861_v17, 4  ;;  %v2249_v38 = vld [vmem:[%s2837_s19 + $0x30] sm:$0xff]  ;;  %v1028_v39 = vperm.slane %v2861_v17, 5  ;;  %v1054_v40 = vperm.slane %v2861_v17, 7  ;;  %v1041_v41 = vperm.slane %v2861_v17, 6  ;;  %v2254_v42 = vld [vmem:[%s2844_s29 + $0x18] sm:$0xff] }
  0x6b   : > { %v2258_v43 = vld [vmem:[%s2844_s29 + $0x38] sm:$0xff]  ;;  %v2893_v47 = vld [vmem:[%s3626_s5] ss:$0 sm:$0xff] }
  0x6c   : > { %968 = vperm.xlu1 %2364, %v963_v20   ;;  %v2246_v44 = vld [vmem:[%s2837_s19 + $0x18] sm:$0xff]  ;;  %v2898_v50 = vld [vmem:[%s3627_s6] ss:$0 sm:$0xff] }
  0x6d   : > { %666 = vmatpush.bf16.msra.mxu0 %v2271_v6  ;;  %2278 = vmatpush.bf16.msra.mxu2 %v2271_v6  ;;  %v2250_v45 = vld [vmem:[%s2837_s19 + $0x38] sm:$0xff] }
  0x6e   : > { %811 = vmatpush.bf16.msra.mxu1 %v2263_v7  ;;  %2286 = vmatpush.bf16.msra.mxu3 %v2263_v7 }
  0x6f   : > { %974 = vperm.xlu2 %2365, %v963_v20   ;;  %1026 = vperm.xlu0 %2366, %v1015_v34  }
  0x71   : > { %667 = vmatpush.bf16.msra.mxu0 %v2270_v8  ;;  %2279 = vmatpush.bf16.msra.mxu2 %v2270_v8 }
  0x72   : > { %812 = vmatpush.bf16.msra.mxu1 %v2262_v9  ;;  %2287 = vmatpush.bf16.msra.mxu3 %v2262_v9 }
  0x74   : > { %994 = vperm.xlu1 %2364, %v989_v28  }
  0x75   : > { %668 = vmatpush.bf16.msra.mxu0 %v2269_v12  ;;  %2280 = vmatpush.bf16.msra.mxu2 %v2269_v12 }
  0x76   : > { %813 = vmatpush.bf16.msra.mxu1 %v2261_v14  ;;  %2288 = vmatpush.bf16.msra.mxu3 %v2261_v14 }
  0x77   : > { %987 = vperm.xlu2 %2365, %v976_v27   ;;  %2367 = vset.pattern.permute.xlu0 %v965_v11 }
  0x79   : > { %669 = vmatpush.bf16.msra.mxu0 %v2268_v18  ;;  %2281 = vmatpush.bf16.msra.mxu2 %v2268_v18 }
  0x7a   : > { %814 = vmatpush.bf16.msra.mxu1 %v2260_v19  ;;  %2289 = vmatpush.bf16.msra.mxu3 %v2260_v19 }
  0x7c   : > { %1007 = vperm.xlu1 %2364, %v1002_v33  }
  0x7d   : > { %670 = vmatpush.bf16.msra.mxu0 %v2267_v21  ;;  %2282 = vmatpush.bf16.msra.mxu2 %v2267_v21 }
  0x7e   : > { %815 = vmatpush.bf16.msra.mxu1 %v2259_v22  ;;  %2290 = vmatpush.bf16.msra.mxu3 %v2259_v22 }
  0x7f   : > { %1000 = vperm.xlu2 %2365, %v989_v28   ;;  %981 = vperm.xlu0 %2367, %v976_v27  }
  0x80   : > { %671 = vmatmul.bf16.vlgmr.msra.gmra.mxu0 %v2251_v23  ;;  %691 = vmatmul.bf16.vlgmr.msra.gmra.mxu2 %v2255_v24 }
  0x81   : > { %816 = vmatmul.bf16.vlgmr.msra.gmra.mxu1 %v2243_v25  ;;  %836 = vmatmul.bf16.vlgmr.msra.gmra.mxu3 %v2247_v26 }
  0x84   : > { %1020 = vperm.xlu1 %2364, %v1015_v34  }
  0x87   : > { %1013 = vperm.xlu2 %2365, %v1002_v33   ;;  %1059 = vperm.xlu0 %2367, %v1054_v40  }
  0x8c   : > { %2369 = vset.pattern.permute.xlu1 %v2858_v15 }
  0x8f   : > { %2368 = vset.pattern.permute.xlu2 %v965_v11 }
  0x90   : > { %676 = vmatmul.bf16.gmra.mxu0 %v2252_v29  ;;  %696 = vmatmul.bf16.gmra.mxu2 %v2256_v30 }
  0x91   : > { %821 = vmatmul.bf16.gmra.mxu1 %v2244_v31  ;;  %841 = vmatmul.bf16.gmra.mxu3 %v2248_v32 }
  0x94   : > { %1039 = vperm.xlu1 %2369, %v1028_v39  }
  0x97   : > { %1033 = vperm.xlu2 %2368, %v1028_v39  }
  0x9c   : > { %1052 = vperm.xlu1 %2369, %v1041_v41  }
  0x9f   : > { %1046 = vperm.xlu2 %2368, %v1041_v41  }
  0xa0   : > { %681 = vmatmul.bf16.gmra.mxu0 %v2253_v35  ;;  %701 = vmatmul.bf16.gmra.mxu2 %v2257_v36 }
  0xa1   : > { %826 = vmatmul.bf16.gmra.mxu1 %v2245_v37  ;;  %846 = vmatmul.bf16.gmra.mxu3 %v2249_v38 }
  0xa7   : > { %2370 = vset.pattern.permute.xlu2 %v2858_v15 }
  0xaf   : > { %1065 = vperm.xlu2 %2370, %v1054_v40  }
  0xb0   : > { %686 = vmatmul.bf16.gmra.mxu0 %v2254_v42  ;;  %706 = vmatmul.bf16.gmra.mxu2 %v2258_v43 }
  0xb1   : > { %831 = vmatmul.bf16.gmra.mxu1 %v2246_v44  ;;  %851 = vmatmul.bf16.gmra.mxu3 %v2250_v45 }
  0xfd   : > { %v672_v46 = vpop.f32.mrf.mxu0 }
  0xfe   : > { %v817_v48 = vpop.f32.mrf.mxu1 }
  0xff   : > { %v818_v49 = vadd.f32 %v817_v48, %v672_v46 }
 0x101   : > { %v2901_v51 = vadd.f32 %v2893_v47, %v818_v49 }
 0x103   : > { %v692_v52 = vpop.f32.mrf.mxu2  ;;  %v879_v53 = vmul.f32 %v2898_v50, %v2901_v51 }
 0x104   : > { %v837_v54 = vpop.f32.mrf.mxu3 }
 0x105   : > { %v838_v55 = vadd.f32 %v837_v54, %v692_v52  ;;  %895 = vadd.xlane.f32.xlu0 %v879_v53  ;;  %v674_v56 = vpop.f32.mrf.mxu0 }
 0x106   : > { %v819_v57 = vpop.f32.mrf.mxu1 }
 0x107   : > { %v2906_v58 = vadd.f32 %v2893_v47, %v838_v55  ;;  %v820_v59 = vadd.f32 %v819_v57, %v674_v56 }
 0x109   : > { %v2909_v60 = vadd.f32 %v2893_v47, %v820_v59  ;;  %v887_v61 = vmul.f32 %v2898_v50, %v2906_v58 }
 0x10b   : > { %911 = vadd.xlane.f32.xlu2 %v887_v61  ;;  %v694_v62 = vpop.f32.mrf.mxu2  ;;  %v880_v63 = vmul.f32 %v2898_v50, %v2909_v60 }
 0x10c   : > { %v839_v0 = vpop.f32.mrf.mxu3 }
 0x10d   : > { %v840_v1 = vadd.f32 %v839_v0, %v694_v62  ;;  %897 = vadd.xlane.f32.xlu0 %v880_v63  ;;  %v677_v2 = vpop.f32.mrf.mxu0 }
 0x10e   : > { %v822_v3 = vpop.f32.mrf.mxu1 }
 0x10f   : > { %v2916_v4 = vadd.f32 %v2893_v47, %v840_v1  ;;  %v823_v5 = vadd.f32 %v822_v3, %v677_v2 }
 0x111   : > { %v2919_v6 = vadd.f32 %v2893_v47, %v823_v5  ;;  %v888_v9 = vmul.f32 %v2898_v50, %v2916_v4  ;;  %v975_v5 = vpop.permute.xlu2 %974 }
 0x113   : > { %v697_v7 = vpop.f32.mrf.mxu2  ;;  %v881_v8 = vmul.f32 %v2898_v50, %v2919_v6 }
 0x114   : > { %v842_v11 = vpop.f32.mrf.mxu3 }
 0x115   : > { %v843_v12 = vadd.f32 %v842_v11, %v697_v7  ;;  %899 = vadd.xlane.f32.xlu1 %v881_v8  ;;  %913 = vadd.xlane.f32.xlu0 %v888_v9  ;;  %v679_v13 = vpop.f32.mrf.mxu0  ;;  %v969_v11 = vpop.permute.xlu1 %968 }
 0x116   : > { %v824_v14 = vpop.f32.mrf.mxu1 }
 0x117   : > { %v2926_v15 = vadd.f32 %v2893_v47, %v843_v12  ;;  %v825_v17 = vadd.f32 %v824_v14, %v679_v13 }
 0x119   : > { %v889_v16 = vmul.f32 %v2898_v50, %v2926_v15  ;;  %v2931_v23 = vadd.f32 %v2893_v47, %v825_v17  ;;  %v988_v9 = vpop.permute.xlu2 %987  ;;  %v2625_v17 = vmov 0  }
 0x11a   : > { %2371 = vset.pattern.permute.xlu1 %v2625_v17  ;;  %2372 = vset.pattern.permute.xlu0 %v2625_v17 }
 0x11b   : > { %v699_v18 = vpop.f32.mrf.mxu2  ;;  %v882_v28 = vmul.f32 %v2898_v50, %v2931_v23  ;;  %2373 = vset.pattern.permute.xlu2 %v2625_v17 }
 0x11c   : > { %v844_v19 = vpop.f32.mrf.mxu3 }
 0x11d   : > { %v845_v20 = vadd.f32 %v844_v19, %v699_v18  ;;  %915 = vadd.xlane.f32.xlu1 %v889_v16  ;;  %v682_v21 = vpop.f32.mrf.mxu0  ;;  %v995_v13 = vpop.permute.xlu1 %994 }
 0x11e   : > { %v827_v22 = vpop.f32.mrf.mxu1  ;;  %v1027_v16 = vpop.permute.xlu0 %1026 }
 0x11f   : > { %v2934_v24 = vadd.f32 %v2893_v47, %v845_v20  ;;  %v828_v25 = vadd.f32 %v827_v22, %v682_v21 }
 0x121   : > { %v890_v26 = vmul.f32 %v2898_v50, %v2934_v24  ;;  %v2941_v30 = vadd.f32 %v2893_v47, %v828_v25  ;;  %v2980_v12 = vpop.permute.xlu2 %1000 }
 0x123   : > { %917 = vadd.xlane.f32.xlu2 %v890_v26  ;;  %v702_v27 = vpop.f32.mrf.mxu2  ;;  %v883_v36 = vmul.f32 %v2898_v50, %v2941_v30  ;;  %v2990_v26 = vstv %s565_s3 }
 0x124   : > { %v847_v29 = vpop.f32.mrf.mxu3 }
 0x125   : > { %v848_v31 = vadd.f32 %v847_v29, %v702_v27  ;;  %901 = vadd.xlane.f32.xlu1 %v882_v28  ;;  %v684_v32 = vpop.f32.mrf.mxu0  ;;  %v2984_v18 = vpop.permute.xlu1 %1007 }
 0x126   : > { %v829_v33 = vpop.f32.mrf.mxu1  ;;  %v982_v19 = vpop.permute.xlu0 %981 }
 0x127   : > { %v2944_v34 = vadd.f32 %v2893_v47, %v848_v31  ;;  %v830_v35 = vadd.f32 %v829_v33, %v684_v32 }
 0x129   : > { %v891_v37 = vmul.f32 %v2898_v50, %v2944_v34  ;;  %v2951_v40 = vadd.f32 %v2893_v47, %v830_v35  ;;  %v2982_v14 = vpop.permute.xlu2 %1013 }
 0x12b   : > { %903 = vadd.xlane.f32.xlu2 %v883_v36  ;;  %919 = vadd.xlane.f32.xlu0 %v891_v37  ;;  %v704_v38 = vpop.f32.mrf.mxu2  ;;  %v884_v48 = vmul.f32 %v2898_v50, %v2951_v40 }
 0x12c   : > { %v849_v39 = vpop.f32.mrf.mxu3 }
 0x12d   : > { %v850_v41 = vadd.f32 %v849_v39, %v704_v38  ;;  %v687_v42 = vpop.f32.mrf.mxu0  ;;  %v1021_v20 = vpop.permute.xlu1 %1020 }
 0x12e   : > { %v832_v43 = vpop.f32.mrf.mxu1 }
 0x12f   : > { %v2954_v44 = vadd.f32 %v2893_v47, %v850_v41  ;;  %v833_v45 = vadd.f32 %v832_v43, %v687_v42 }
 0x131   : > { %v2957_v46 = vadd.f32 %v2893_v47, %v833_v45  ;;  %v892_v49 = vmul.f32 %v2898_v50, %v2954_v44 }
 0x133   : > { %905 = vadd.xlane.f32.xlu2 %v884_v48  ;;  %921 = vadd.xlane.f32.xlu1 %v892_v49  ;;  %v707_v52 = vpop.f32.mrf.mxu2  ;;  %v885_v53 = vmul.f32 %v2898_v50, %v2957_v46 }
 0x134   : > { %v852_v54 = vpop.f32.mrf.mxu3 }
 0x135   : > { %v853_v55 = vadd.f32 %v852_v54, %v707_v52  ;;  %907 = vadd.xlane.f32.xlu0 %v885_v53  ;;  %v689_v56 = vpop.f32.mrf.mxu0  ;;  %v1040_v25 = vpop.permute.xlu1 %1039 }
 0x136   : > { %v834_v57 = vpop.f32.mrf.mxu1 }
 0x137   : > { %v2966_v59 = vadd.f32 %v2893_v47, %v853_v55  ;;  %v835_v61 = vadd.f32 %v834_v57, %v689_v56 }
 0x139   : > { %v2969_v62 = vadd.f32 %v2893_v47, %v835_v61  ;;  %v893_v63 = vmul.f32 %v2898_v50, %v2966_v59 }
 0x13b   : > { %923 = vadd.xlane.f32.xlu2 %v893_v63  ;;  %v709_v0 = vpop.f32.mrf.mxu2  ;;  %v886_v1 = vmul.f32 %v2898_v50, %v2969_v62 }
 0x13c   : > { %v854_v2 = vpop.f32.mrf.mxu3 }
 0x13d   : > { %v855_v3 = vadd.f32 %v854_v2, %v709_v0  ;;  %909 = vadd.xlane.f32.xlu1 %v886_v1  ;;  %v2997_v35 = vpop.permute.xlu1 %1052 }
 0x13f   : > { %v2976_v7 = vadd.f32 %v2893_v47, %v855_v3  ;;  %v1034_v47 = vpop.permute.xlu2 %1033 }
 0x141   : > { %v894_v8 = vmul.f32 %v2898_v50, %v2976_v7  ;;  %v2986_v50 = vpop.permute.xlu0 %1059 }
 0x143   : > { %925 = vadd.xlane.f32.xlu0 %v894_v8 }
 0x147   : > { %v1047_v21 = vpop.permute.xlu2 %1046 }
 0x14f   : > { %v2988_v22 = vpop.permute.xlu2 %1065 }
 0x178   : > { %v896_v27 = vpop.xlane.xlu0 %895 }
 0x179   : > { %v928_v28 = vadd.f32 %v2990_v26, %v896_v27 }
 0x17b   : > { %v944_v29 = vmul.f32 0.088388346, %v928_v28 }
 0x17d   : > { %v2993_v31 = vadd.f32 %v969_v11, %v944_v29 }
 0x17e   : > { %v912_v32 = vpop.xlane.xlu2 %911 }
 0x17f   : > { %v936_v33 = vadd.f32 %v2990_v26, %v912_v32  ;;  %1116 = vperm.xlu1 %2371, %v2993_v31  }
 0x180   : > { %v898_v36 = vpop.xlane.xlu0 %897 }
 0x181   : > { %v952_v37 = vmul.f32 0.088388346, %v936_v33  ;;  %v929_v38 = vadd.f32 %v2990_v26, %v898_v36 }
 0x183   : > { %v3000_v39 = vadd.f32 %v1021_v20, %v952_v37  ;;  %v945_v41 = vmul.f32 0.088388346, %v929_v38 }
 0x185   : > { %v3002_v42 = vadd.f32 %v975_v5, %v945_v41  ;;  %1140 = vperm.xlu0 %2372, %v3000_v39  }
 0x187   : > { %1119 = vperm.xlu2 %2373, %v3002_v42  }
 0x188   : > { %v900_v43 = vpop.xlane.xlu1 %899  ;;  %v914_v45 = vpop.xlane.xlu0 %913 }
 0x189   : > { %v930_v48 = vadd.f32 %v2990_v26, %v900_v43  ;;  %v937_v49 = vadd.f32 %v2990_v26, %v914_v45 }
 0x18b   : > { %v946_v52 = vmul.f32 0.088388346, %v930_v48  ;;  %v953_v53 = vmul.f32 0.088388346, %v937_v49 }
 0x18d   : > { %v3008_v54 = vadd.f32 %v982_v19, %v946_v52  ;;  %v3010_v55 = vadd.f32 %v1027_v16, %v953_v53 }
 0x18f   : > { %1122 = vperm.xlu1 %2371, %v3008_v54   ;;  %1143 = vperm.xlu2 %2373, %v3010_v55  }
 0x190   : > { %v916_v56 = vpop.xlane.xlu1 %915 }
 0x191   : > { %v938_v57 = vadd.f32 %v2990_v26, %v916_v56 }
 0x193   : > { %v954_v61 = vmul.f32 0.088388346, %v938_v57 }
 0x195   : > { %v3015_v63 = vadd.f32 %v1034_v47, %v954_v61 }
 0x196   : > { %v918_v0 = vpop.xlane.xlu2 %917 }
 0x197   : > { %1146 = vperm.xlu1 %2371, %v3015_v63   ;;  %v939_v5 = vadd.f32 %v2990_v26, %v918_v0 }
 0x198   : > { %v902_v1 = vpop.xlane.xlu1 %901 }
 0x199   : > { %v931_v2 = vadd.f32 %v2990_v26, %v902_v1  ;;  %v955_v19 = vmul.f32 0.088388346, %v939_v5 }
 0x19b   : > { %v947_v3 = vmul.f32 0.088388346, %v931_v2  ;;  %v3027_v28 = vadd.f32 %v1040_v25, %v955_v19 }
 0x19d   : > { %v3020_v8 = vadd.f32 %v988_v9, %v947_v3 }
 0x19e   : > { %v904_v11 = vpop.xlane.xlu2 %903  ;;  %v920_v17 = vpop.xlane.xlu0 %919 }
 0x19f   : > { %v932_v16 = vadd.f32 %v2990_v26, %v904_v11  ;;  %1125 = vperm.xlu0 %2372, %v3020_v8   ;;  %v940_v27 = vadd.f32 %v2990_v26, %v920_v17 }
 0x1a1   : > { %v948_v47 = vmul.f32 0.088388346, %v932_v16  ;;  %v956_v32 = vmul.f32 0.088388346, %v940_v27  ;;  %v3065_v27 = vand.u32 127, %v964_v10 }
 0x1a3   : > { %v3024_v20 = vadd.f32 %v995_v13, %v948_v47  ;;  %v3032_v38 = vadd.f32 %v1047_v21, %v956_v32 }
 0x1a5   : > { %1128 = vperm.xlu2 %2373, %v3024_v20  }
 0x1a6   : > { %v906_v29 = vpop.xlane.xlu2 %905  ;;  %v922_v33 = vpop.xlane.xlu1 %921 }
 0x1a7   : > { %v933_v9 = vadd.f32 %v2990_v26, %v906_v29  ;;  %1149 = vperm.xlu0 %2372, %v3027_v28   ;;  %v941_v56 = vadd.f32 %v2990_v26, %v922_v33 }
 0x1a8   : > { %v908_v36 = vpop.xlane.xlu0 %907 }
 0x1a9   : > { %v949_v37 = vmul.f32 0.088388346, %v933_v9  ;;  %v934_v41 = vadd.f32 %v2990_v26, %v908_v36 }
 0x1ab   : > { %v3035_v13 = vadd.f32 %v2980_v12, %v949_v37  ;;  %v950_v43 = vmul.f32 0.088388346, %v934_v41 }
 0x1ad   : > { %1131 = vperm.xlu1 %2371, %v3035_v13   ;;  %1152 = vperm.xlu2 %2373, %v3032_v38   ;;  %v3043_v21 = vadd.f32 %v2984_v18, %v950_v43  ;;  %v957_v18 = vmul.f32 0.088388346, %v941_v56 }
 0x1ae   : > { %v924_v25 = vpop.xlane.xlu2 %923 }
 0x1af   : > { %v942_v45 = vadd.f32 %v2990_v26, %v924_v25  ;;  %v3060_v2 = vadd.f32 %v2997_v35, %v957_v18  ;;  %v3068_v35 = vadd.s32 4294967288, %v3065_v27 }
 0x1b0   : > { %v910_v48 = vpop.xlane.xlu1 %909 }
 0x1b1   : > { %v958_v49 = vmul.f32 0.088388346, %v942_v45  ;;  %v935_v52 = vadd.f32 %v2990_v26, %v910_v48 }
 0x1b3   : > { %v3046_v12 = vadd.f32 %v2986_v50, %v958_v49  ;;  %v951_v53 = vmul.f32 0.088388346, %v935_v52 }
 0x1b5   : > { %v3050_v57 = vadd.f32 %v2982_v14, %v951_v53  ;;  %1158 = vperm.xlu0 %2372, %v3046_v12   ;;  %1134 = vperm.xlu2 %2373, %v3043_v21  }
 0x1b6   : > { %v926_v61 = vpop.xlane.xlu0 %925 }
 0x1b7   : > { %v943_v0 = vadd.f32 %v2990_v26, %v926_v61  ;;  %1137 = vperm.xlu1 %2371, %v3050_v57  }
 0x1b9   : > { %v959_v1 = vmul.f32 0.088388346, %v943_v0 }
 0x1bb   : > { %v3057_v50 = vadd.f32 %v2988_v22, %v959_v1 }
 0x1bd   : > { %1161 = vperm.xlu2 %2373, %v3057_v50  }
 0x1bf   : > { %1155 = vperm.xlu1 %2371, %v3060_v2  }
 0x1e1   : > { %v1120_v14 = vpop.permute.xlu2 %1119 }
 0x1e2   : > { %v1167_v10 = vperm.slane %v1120_v14, %v3068_v35 }
 0x1e9   : > { %v1144_v5 = vpop.permute.xlu2 %1143 }
 0x1ea   : > { %v1180_v18 = vperm.slane %v1144_v5, %v3068_v35 }
 0x1f1   : > { %v1117_v3 = vpop.permute.xlu1 %1116 }
 0x1f2   : > { %v1165_v36 = vperm.slane %v1117_v3, %v3065_v27 }
 0x1f4   : > { %v1169_v52 = vsel %vm1168_vm0, %v1167_v10, %v1165_v36 }
 0x1f7   : > { %v1141_v26 = vpop.permute.xlu0 %1140 }
 0x1f8   : > { %v1179_v53 = vperm.slane %v1141_v26, %v3065_v27 }
 0x1ff   : > { %v1129_v16 = vpop.permute.xlu2 %1128 }
 0x200   : > { %v1173_v41 = vperm.slane %v1129_v16, %v3065_v27 }
 0x201   : > { %v1123_v11 = vpop.permute.xlu1 %1122 }
 0x202   : > { %v1170_v37 = vperm.slane %v1123_v11, %v3065_v27  ;;  %v1181_v11 = vsel %vm1168_vm0, %v1180_v18, %v1179_v53 }
 0x207   : > { %v1153_v19 = vpop.permute.xlu2 %1152 }
 0x209   : > { %v1147_v17 = vpop.permute.xlu1 %1146 }
 0x20f   : > { %v1135_v32 = vpop.permute.xlu2 %1134 }
 0x210   : > { %v1176_v45 = vperm.slane %v1135_v32, %v3065_v27  ;;  %v1185_v32 = vperm.slane %v1153_v19, %v3065_v27 }
 0x211   : > { %v1126_v47 = vpop.permute.xlu0 %1125 }
 0x212   : > { %v1171_v29 = vperm.slane %v1126_v47, %v3068_v35  ;;  %v1182_v47 = vperm.slane %v1147_v17, %v3065_v27 }
 0x214   : > { %v1172_v25 = vsel %vm1168_vm0, %v1171_v29, %v1170_v37 }
 0x215   : > { %v1192_v56 = vsel %vm1191_vm1, %v1172_v25, %v1169_v52 }
 0x217   : > { %v1162_v16 = vpop.permute.xlu2 %1161 }
 0x219   : > { %v1150_v9 = vpop.permute.xlu0 %1149 }
 0x21a   : > { %v1183_v3 = vperm.slane %v1150_v9, %v3068_v35 }
 0x21c   : > { %v1184_v9 = vsel %vm1168_vm0, %v1183_v3, %v1182_v47 }
 0x21f   : > { %v1132_v22 = vpop.permute.xlu1 %1131 }
 0x220   : > { %v1174_v33 = vperm.slane %v1132_v22, %v3068_v35 }
 0x222   : > { %v1175_v48 = vsel %vm1168_vm0, %v1174_v33, %v1173_v41  ;;  %v1189_v33 = vperm.slane %v1162_v16, %v3068_v35 }
 0x223   : > { %v1194_v0 = vsel %vm1193_vm2, %v1175_v48, %v1192_v56 }
 0x227   : > { %v1159_v1 = vpop.permute.xlu0 %1158 }
 0x228   : > { %v1188_v26 = vperm.slane %v1159_v1, %v3065_v27 }
 0x229   : > { %v1138_v43 = vpop.permute.xlu1 %1137 }
 0x22a   : > { %v1177_v49 = vperm.slane %v1138_v43, %v3068_v35  ;;  %v1190_v37 = vsel %vm1168_vm0, %v1189_v33, %v1188_v26 }
 0x22c   : > { %v1178_v61 = vsel %vm1168_vm0, %v1177_v49, %v1176_v45 }
 0x22d   : > { %v1196_v14 = vsel %vm1195_vm3, %v1178_v61, %v1194_v0 }
 0x22e   : > { %v1198_v29 = vsel %vm1197_vm4, %v1181_v11, %v1196_v14 }
 0x22f   : > { %v1200_v17 = vsel %vm1199_vm5, %v1184_v9, %v1198_v29 }
 0x231   : > { %v1156_v22 = vpop.permute.xlu1 %1155 }
 0x232   : > { %v1186_v5 = vperm.slane %v1156_v22, %v3068_v35 }
 0x234   : > { %v1187_v36 = vsel %vm1168_vm0, %v1186_v5, %v1185_v32 }
 0x235   : > { %v1202_v41 = vsel %vm1201_vm6, %v1187_v36, %v1200_v17 }
 0x236   : > { %v1204_v10 = vsel %vm1203_vm7, %v1190_v37, %v1202_v41 }
 0x237   : > { %v1207_v19 = vsel %vm1206_vm8, %v1204_v10, -inf }
 0x238   : > { %1208 = vmax.xlane.f32.xlu1 %v1207_v19 }
 0x2ab   : > { %v3102_v25 = vpop.xlane.xlu1 %1208 }
 0x2ac   : > { %v1216_v43 = vperm.slane %v3102_v25, 5  ;;  %v1211_v45 = vperm.slane %v3102_v25, 0  ;;  %v1212_v53 = vperm.slane %v3102_v25, 1  ;;  %v1213_v3 = vperm.slane %v3102_v25, 2 }
 0x2ad   : > { %v1214_v47 = vperm.slane %v3102_v25, 3 }
 0x2ae   : > { %v1237_v48 = vsub.f32 %v3015_v63, %v1216_v43  ;;  %v1228_v49 = vsub.f32 %v3002_v42, %v1211_v45  ;;  %v1227_v52 = vsub.f32 %v2993_v31, %v1211_v45  ;;  %v1230_v18 = vsub.f32 %v3020_v8, %v1212_v53 }
 0x2af   : > { %v1229_v1 = vsub.f32 %v3008_v54, %v1212_v53  ;;  %v1232_v8 = vsub.f32 %v3035_v13, %v1213_v3  ;;  %v1231_v54 = vsub.f32 %v3024_v20, %v1213_v3  ;;  %v1234_v32 = vsub.f32 %v3050_v57, %v1214_v47 }
 0x2b0   : > { %v1263_v56 = vmul.f32 1.442695, %v1237_v48  ;;  %v1245_v61 = vmul.f32 1.442695, %v1228_v49  ;;  %v1243_v0 = vmul.f32 1.442695, %v1227_v52  ;;  %v1233_v13 = vsub.f32 %v3043_v21, %v1214_v47 }
 0x2b1   : > { %v1249_v14 = vmul.f32 1.442695, %v1230_v18  ;;  %v1247_v42 = vmul.f32 1.442695, %v1229_v1  ;;  %v1253_v16 = vmul.f32 1.442695, %v1232_v8 }
 0x2b2   : > { %2377 = vpow2.f32 %v1263_v56  ;;  %v1251_v26 = vmul.f32 1.442695, %v1231_v54  ;;  %v1257_v5 = vmul.f32 1.442695, %v1234_v32  ;;  %v1215_v20 = vperm.slane %v3102_v25, 4 }
 0x2b3   : > { %2379 = vpow2.f32 %v1245_v61  ;;  %v1255_v33 = vmul.f32 1.442695, %v1233_v13  ;;  %v1217_v21 = vperm.slane %v3102_v25, 6 }
 0x2b4   : > { %2381 = vpow2.f32 %v1243_v0  ;;  %v1236_v17 = vsub.f32 %v3010_v55, %v1215_v20  ;;  %v1235_v57 = vsub.f32 %v3000_v39, %v1215_v20  ;;  %v1238_v55 = vsub.f32 %v3027_v28, %v1216_v43 }
 0x2b5   : > { %2383 = vpow2.f32 %v1249_v14  ;;  %v1239_v45 = vsub.f32 %v3032_v38, %v1217_v21  ;;  %v1218_v39 = vperm.slane %v3102_v25, 7  ;;  %v1240_v38 = vsub.f32 %v3060_v2, %v1217_v21 }
 0x2b6   : > { %2385 = vpow2.f32 %v1247_v42  ;;  %v1261_v37 = vmul.f32 1.442695, %v1236_v17  ;;  %v1259_v41 = vmul.f32 1.442695, %v1235_v57  ;;  %v1265_v49 = vmul.f32 1.442695, %v1238_v55 }
 0x2b7   : > { %2387 = vpow2.f32 %v1253_v16  ;;  %v1267_v48 = vmul.f32 1.442695, %v1239_v45  ;;  %v1241_v56 = vsub.f32 %v3046_v12, %v1218_v39  ;;  %v1269_v28 = vmul.f32 1.442695, %v1240_v38 }
 0x2b8   : > { %v3113_v63 = vpop.eup %2377  ;;  %2389 = vpow2.f32 %v1251_v26  ;;  %v1242_v0 = vsub.f32 %v3057_v50, %v1218_v39 }
 0x2b9   : > { %v3115_v11 = vpop.eup %2379  ;;  %1322 = vperm.xlu1 %2371, %v3113_v63   ;;  %2391 = vpow2.f32 %v1257_v5  ;;  %v1271_v61 = vmul.f32 1.442695, %v1241_v56 }
 0x2ba   : > { %v3118_v31 = vpop.eup %2381  ;;  %1295 = vperm.xlu2 %2373, %v3115_v11   ;;  %2393 = vpow2.f32 %v1255_v33  ;;  %v1273_v18 = vmul.f32 1.442695, %v1242_v0 }
 0x2bb   : > { %1292 = vperm.xlu0 %2372, %v3118_v31   ;;  %v3125_v22 = vpop.eup %2383  ;;  %2395 = vpow2.f32 %v1261_v37 }
 0x2bc   : > { %v3127_v29 = vpop.eup %2385  ;;  %2397 = vpow2.f32 %v1259_v41 }
 0x2bd   : > { %v3134_v9 = vpop.eup %2387  ;;  %2399 = vpow2.f32 %v1267_v48 }
 0x2be   : > { %v3136_v36 = vpop.eup %2389  ;;  %2401 = vpow2.f32 %v1265_v49 }
 0x2bf   : > { %v3143_v10 = vpop.eup %2391  ;;  %2403 = vpow2.f32 %v1271_v61 }
 0x2c0   : > { %v3145_v19 = vpop.eup %2393  ;;  %2405 = vpow2.f32 %v1269_v28 }
 0x2c1   : > { %v3152_v52 = vpop.eup %2395  ;;  %2407 = vpow2.f32 %v1273_v18 }
 0x2c2   : > { %1301 = vperm.xlu2 %2373, %v3125_v22   ;;  %v3154_v53 = vpop.eup %2397 }
 0x2c3   : > { %1298 = vperm.xlu0 %2372, %v3127_v29   ;;  %v3160_v43 = vpop.eup %2399 }
 0x2c4   : > { %v3162_v25 = vpop.eup %2401 }
 0x2c5   : > { %v3167_v1 = vpop.eup %2403 }
 0x2c6   : > { %v3169_v12 = vpop.eup %2405 }
 0x2c7   : > { %v3173_v2 = vpop.eup %2407 }
 0x2ca   : > { %1307 = vperm.xlu2 %2373, %v3134_v9  }
 0x2cb   : > { %1304 = vperm.xlu0 %2372, %v3136_v36  }
 0x2d2   : > { %1313 = vperm.xlu2 %2373, %v3143_v10  }
 0x2d3   : > { %1310 = vperm.xlu0 %2372, %v3145_v19  }
 0x2da   : > { %1319 = vperm.xlu2 %2373, %v3152_v52  }
 0x2db   : > { %1316 = vperm.xlu0 %2372, %v3154_v53  }
 0x2e2   : > { %1328 = vperm.xlu2 %2373, %v3160_v43  }
 0x2e3   : > { %1325 = vperm.xlu0 %2372, %v3162_v25  }
 0x2ea   : > { %1334 = vperm.xlu2 %2373, %v3167_v1  }
 0x2eb   : > { %1331 = vperm.xlu0 %2372, %v3169_v12  }
 0x2f3   : > { %1337 = vperm.xlu0 %2372, %v3173_v2  }
 0x314   : > { %v1296_v14 = vpop.permute.xlu2 %1295 }
 0x315   : > { %v1340_v48 = vperm.slane %v1296_v14, %v3068_v35 }
 0x31c   : > { %v1302_v42 = vpop.permute.xlu2 %1301 }
 0x31d   : > { %v1343_v57 = vperm.slane %v1302_v42, %v3068_v35 }
 0x324   : > { %v1308_v54 = vpop.permute.xlu2 %1307 }
 0x325   : > { %v1346_v41 = vperm.slane %v1308_v54, %v3068_v35 }
 0x32b   : > { %v1323_v45 = vpop.permute.xlu1 %1322 }
 0x32c   : > { %v1314_v16 = vpop.permute.xlu2 %1313  ;;  %v1354_v0 = vperm.slane %v1323_v45, %v3065_v27 }
 0x32d   : > { %v1293_v3 = vpop.permute.xlu0 %1292  ;;  %v1349_v39 = vperm.slane %v1314_v16, %v3068_v35 }
 0x32e   : > { %v1339_v37 = vperm.slane %v1293_v3, %v3065_v27 }
 0x330   : > { %v1341_v18 = vsel %vm1168_vm0, %v1340_v48, %v1339_v37 }
 0x334   : > { %v1320_v32 = vpop.permute.xlu2 %1319 }
 0x335   : > { %v1299_v8 = vpop.permute.xlu0 %1298  ;;  %v1352_v38 = vperm.slane %v1320_v32, %v3068_v35 }
 0x336   : > { %v1342_v20 = vperm.slane %v1299_v8, %v3065_v27 }
 0x338   : > { %v1344_v49 = vsel %vm1168_vm0, %v1343_v57, %v1342_v20 }
 0x339   : > { %v1363_v14 = vsel %vm1191_vm1, %v1344_v49, %v1341_v18 }
 0x33c   : > { %v1329_v5 = vpop.permute.xlu2 %1328 }
 0x33d   : > { %v1305_v50 = vpop.permute.xlu0 %1304  ;;  %v1357_v42 = vperm.slane %v1329_v5, %v3065_v27 }
 0x33e   : > { %v1345_v33 = vperm.slane %v1305_v50, %v3065_v27 }
 0x340   : > { %v1347_v61 = vsel %vm1168_vm0, %v1346_v41, %v1345_v33 }
 0x341   : > { %v1364_v50 = vsel %vm1193_vm2, %v1347_v61, %v1363_v14 }
 0x344   : > { %v1335_v8 = vpop.permute.xlu2 %1334 }
 0x345   : > { %v1311_v47 = vpop.permute.xlu0 %1310 }
 0x346   : > { %v1348_v21 = vperm.slane %v1311_v47, %v3065_v27 }
 0x348   : > { %v1350_v3 = vsel %vm1168_vm0, %v1349_v39, %v1348_v21 }
 0x349   : > { %v1365_v47 = vsel %vm1195_vm3, %v1350_v3, %v1364_v50 }
 0x34d   : > { %v1317_v26 = vpop.permute.xlu0 %1316 }
 0x34e   : > { %v1351_v55 = vperm.slane %v1317_v26, %v3065_v27 }
 0x350   : > { %v1353_v54 = vsel %vm1168_vm0, %v1352_v38, %v1351_v55 }
 0x351   : > { %v1366_v20 = vsel %vm1197_vm4, %v1353_v54, %v1365_v47 }
 0x355   : > { %v1326_v13 = vpop.permute.xlu0 %1325 }
 0x356   : > { %v1355_v56 = vperm.slane %v1326_v13, %v3068_v35  ;;  %v1360_v13 = vperm.slane %v1335_v8, %v3065_v27 }
 0x358   : > { %v1356_v16 = vsel %vm1168_vm0, %v1355_v56, %v1354_v0 }
 0x359   : > { %v1367_v5 = vsel %vm1199_vm5, %v1356_v16, %v1366_v20 }
 0x35d   : > { %v1332_v17 = vpop.permute.xlu0 %1331 }
 0x35e   : > { %v1358_v28 = vperm.slane %v1332_v17, %v3068_v35 }
 0x360   : > { %v1359_v26 = vsel %vm1168_vm0, %v1358_v28, %v1357_v42 }
 0x361   : > { %v1368_v57 = vsel %vm1201_vm6, %v1359_v26, %v1367_v5 }
 0x365   : > { %v1338_v32 = vpop.permute.xlu0 %1337 }
 0x366   : > { %v1361_v33 = vperm.slane %v1338_v32, %v3068_v35 }
 0x368   : > { %v1362_v17 = vsel %vm1168_vm0, %v1361_v33, %v1360_v13 }
 0x369   : > { %v1369_v37 = vsel %vm1203_vm7, %v1362_v17, %v1368_v57 }
 0x36a   : > { %v1371_v21 = vsel %vm1206_vm8, %v1369_v37, 0.0 }
 0x36b   : > { %1372 = vadd.xlane.f32.xlu2 %v1371_v21 }
 0x3de   : > { %v1373_v41 = vpop.xlane.xlu2 %1372 }
 0x3df   : > { %2409 = vrcp.f32 %v1373_v41 }
 0x3e5   : > { %v2410_v45 = vpop.eup %2409 }
 0x3e6   : > { %v1381_v55 = vperm.slane %v2410_v45, 5  ;;  %v1377_v27 = vperm.slane %v2410_v45, 1  ;;  %v1378_v49 = vperm.slane %v2410_v45, 2  ;;  %v1376_v61 = vperm.slane %v2410_v45, 0 }
 0x3e7   : > { %v1380_v18 = vperm.slane %v2410_v45, 4  ;;  %v1382_v3 = vperm.slane %v2410_v45, 6  ;;  %v1383_v14 = vperm.slane %v2410_v45, 7 }
 0x3e8   : > { %v1402_v48 = vmul.f32 %v3113_v63, %v1381_v55  ;;  %v1395_v35 = vmul.f32 %v3125_v22, %v1377_v27  ;;  %v1394_v39 = vmul.f32 %v3127_v29, %v1377_v27  ;;  %v1397_v56 = vmul.f32 %v3134_v9, %v1378_v49 }
 0x3e9   : > { %v1396_v38 = vmul.f32 %v3136_v36, %v1378_v49  ;;  %v1393_v28 = vmul.f32 %v3115_v11, %v1376_v61  ;;  %v1392_v0 = vmul.f32 %v3118_v31, %v1376_v61  ;;  %v1379_v63 = vperm.slane %v2410_v45, 3 }
 0x3ea   : > { %1460 = vperm.xlu2 %2373, %v1402_v48   ;;  %1425 = vperm.xlu0 %2372, %v1395_v35   ;;  %v1401_v9 = vmul.f32 %v3152_v52, %v1380_v18  ;;  %v1400_v36 = vmul.f32 %v3154_v53, %v1380_v18  ;;  %v1404_v11 = vmul.f32 %v3160_v43, %v1382_v3 }
 0x3eb   : > { %1420 = vperm.xlu1 %2371, %v1394_v39   ;;  %v1399_v22 = vmul.f32 %v3143_v10, %v1379_v63  ;;  %v1398_v29 = vmul.f32 %v3145_v19, %v1379_v63  ;;  %v1403_v31 = vmul.f32 %v3162_v25, %v1381_v55  ;;  %v1406_v10 = vmul.f32 %v3167_v1, %v1383_v14 }
 0x3ec   : > { %v1405_v19 = vmul.f32 %v3169_v12, %v1382_v3  ;;  %v1407_v52 = vmul.f32 %v3173_v2, %v1383_v14 }
 0x3f2   : > { %1435 = vperm.xlu0 %2372, %v1397_v56  }
 0x3f3   : > { %1430 = vperm.xlu1 %2371, %v1396_v38  }
 0x3fa   : > { %1415 = vperm.xlu0 %2372, %v1393_v28  }
 0x3fb   : > { %1410 = vperm.xlu1 %2371, %v1392_v0  }
 0x402   : > { %1445 = vperm.xlu0 %2372, %v1399_v22  }
 0x403   : > { %1440 = vperm.xlu1 %2371, %v1398_v29  }
 0x40a   : > { %1455 = vperm.xlu0 %2372, %v1401_v9  }
 0x40b   : > { %1450 = vperm.xlu1 %2371, %v1400_v36  }
 0x412   : > { %1470 = vperm.xlu0 %2372, %v1404_v11  }
 0x413   : > { %1465 = vperm.xlu1 %2371, %v1403_v31  }
 0x41a   : > { %1480 = vperm.xlu0 %2372, %v1406_v10  }
 0x41b   : > { %1475 = vperm.xlu1 %2371, %v1405_v19  }
 0x423   : > { %1485 = vperm.xlu1 %2371, %v1407_v52  }
 0x45c   : > { %v1426_v53 = vpop.permute.xlu0 %1425 }
 0x45d   : > { %v1491_v42 = vmul.f32 %v1426_v53, %v2931_v23  ;;  %v1421_v8 = vpop.permute.xlu1 %1420 }
 0x45e   : > { %v1490_v43 = vmul.f32 %v1421_v8, %v2919_v6 }
 0x460   : > { %v1511_v54 = vadd.f32 %v1491_v42, %v1490_v43 }
 0x462   : > { %v1512_v25 = vrot.slane %v1511_v54, 4 }
 0x464   : > { %v1513_v50 = vadd.f32 %v1512_v25, %v1511_v54  ;;  %v1436_v16 = vpop.permute.xlu0 %1435 }
 0x465   : > { %v1493_v47 = vmul.f32 %v1436_v16, %v2951_v40  ;;  %v1431_v1 = vpop.permute.xlu1 %1430 }
 0x466   : > { %v1514_v26 = vrot.slane %v1513_v50, 2  ;;  %v1492_v12 = vmul.f32 %v1431_v1, %v2941_v30 }
 0x468   : > { %v1515_v32 = vadd.f32 %v1514_v26, %v1513_v50  ;;  %v1518_v13 = vadd.f32 %v1493_v47, %v1492_v12 }
 0x46a   : > { %v1516_v2 = vrot.slane %v1515_v32, 1  ;;  %v1519_v20 = vrot.slane %v1518_v13, 4 }
 0x46c   : > { %v3228_v33 = vadd.f32 %v1516_v2, %v1515_v32  ;;  %v1520_v23 = vadd.f32 %v1519_v20, %v1518_v13  ;;  %v1416_v5 = vpop.permute.xlu0 %1415 }
 0x46d   : > { %v1489_v6 = vmul.f32 %v1416_v5, %v2909_v60  ;;  %v1411_v17 = vpop.permute.xlu1 %1410 }
 0x46e   : > { %v3232_v57 = vmul.f32 0.70710677, %v3228_v33  ;;  %v1521_v37 = vrot.slane %v1520_v23, 2  ;;  %v1488_v40 = vmul.f32 %v1411_v17, %v2901_v51 }
 0x470   : > { %v1616_v30 = vmul.f32 %v3232_v57, %v3232_v57  ;;  %v1522_v21 = vadd.f32 %v1521_v37, %v1520_v23  ;;  %v1504_v41 = vadd.f32 %v1489_v6, %v1488_v40  ;;  %v1461_v6 = vpop.permute.xlu2 %1460 }
 0x472   : > { %v1505_v45 = vrot.slane %v1504_v41, 4  ;;  %v3237_v55 = vmin.f32 %v1616_v30, 16.0  ;;  %v1523_v27 = vrot.slane %v1522_v21, 1 }
 0x474   : > { %v1506_v48 = vadd.f32 %v1505_v45, %v1504_v41  ;;  %v1446_v35 = vpop.permute.xlu0 %1445  ;;  %v1629_v56 = vmul.f32 3.8918573e-05, %v3237_v55  ;;  %v3241_v38 = vadd.f32 %v1523_v27, %v1522_v21  ;;  %v1618_v47 = vmul.f32 2.1237322e-06, %v3237_v55 }
 0x475   : > { %v1495_v60 = vmul.f32 %v1446_v35, %v2969_v62  ;;  %v1441_v39 = vpop.permute.xlu1 %1440  ;;  %v1498_v41 = vmul.f32 %v1461_v6, %v2926_v15 }
 0x476   : > { %v1507_v49 = vrot.slane %v1506_v48, 2  ;;  %v1494_v51 = vmul.f32 %v1441_v39, %v2957_v46  ;;  %v1630_v63 = vadd.f32 0.001143296, %v1629_v56  ;;  %v3245_v22 = vmul.f32 0.70710677, %v3241_v38 }
 0x477   : > { %v1619_v20 = vadd.f32 0.00028619796, %v1618_v47 }
 0x478   : > { %v1508_v61 = vadd.f32 %v1507_v49, %v1506_v48  ;;  %v1525_v28 = vadd.f32 %v1495_v60, %v1494_v51  ;;  %v1631_v31 = vmul.f32 %v1630_v63, %v3237_v55  ;;  %v1656_v46 = vmul.f32 %v3245_v22, %v3245_v22 }
 0x479   : > { %v1620_v45 = vmul.f32 %v1619_v20, %v3237_v55 }
 0x47a   : > { %v1509_v0 = vrot.slane %v1508_v61, 1  ;;  %v1526_v29 = vrot.slane %v1525_v28, 4  ;;  %v1632_v42 = vadd.f32 0.014752088, %v1631_v31  ;;  %v3257_v8 = vmin.f32 %v1656_v46, 16.0 }
 0x47c   : > { %v3247_v18 = vadd.f32 %v1509_v0, %v1508_v61  ;;  %v1456_v9 = vpop.permute.xlu0 %1455  ;;  %v1527_v62 = vadd.f32 %v1526_v29, %v1525_v28  ;;  %v1633_v25 = vmul.f32 %v1632_v42, %v3237_v55  ;;  %v1669_v50 = vmul.f32 3.8918573e-05, %v3257_v8 }
 0x47d   : > { %v1497_v36 = vmul.f32 %v1456_v9, %v2916_v4  ;;  %v1451_v3 = vpop.permute.xlu1 %1450  ;;  %v1658_v35 = vmul.f32 2.1237322e-06, %v3257_v8 }
 0x47e   : > { %v1496_v11 = vmul.f32 %v1451_v3, %v2906_v58  ;;  %v3255_v14 = vmul.f32 0.70710677, %v3247_v18  ;;  %v1528_v10 = vrot.slane %v1527_v62, 2  ;;  %v1634_v12 = vadd.f32 0.112945676, %v1633_v25 }
 0x47f   : > { %v1670_v32 = vadd.f32 0.001143296, %v1669_v50  ;;  %v1659_v28 = vadd.f32 0.00028619796, %v1658_v35 }
 0x480   : > { %v1532_v19 = vadd.f32 %v1497_v36, %v1496_v11  ;;  %v1529_v52 = vadd.f32 %v1528_v10, %v1527_v62  ;;  %v1576_v4 = vmul.f32 %v3255_v14, %v3255_v14  ;;  %v1635_v40 = vmul.f32 %v1634_v12, %v3237_v55 }
 0x481   : > { %v1671_v30 = vmul.f32 %v1670_v32, %v3257_v8  ;;  %v1660_v11 = vmul.f32 %v1659_v28, %v3257_v8 }
 0x482   : > { %v1533_v53 = vrot.slane %v1532_v19, 4  ;;  %v1530_v43 = vrot.slane %v1529_v52, 1  ;;  %v3266_v1 = vmin.f32 %v1576_v4, 16.0  ;;  %v1636_v39 = vadd.f32 0.4994258, %v1635_v40 }
 0x483   : > { %v1672_v49 = vadd.f32 0.014752088, %v1671_v30 }
 0x484   : > { %v1534_v58 = vadd.f32 %v1533_v53, %v1532_v19  ;;  %v3261_v54 = vadd.f32 %v1530_v43, %v1529_v52  ;;  %v1589_v23 = vmul.f32 3.8918573e-05, %v3266_v1  ;;  %v1637_v63 = vmul.f32 %v1636_v39, %v3237_v55  ;;  %v1471_v10 = vpop.permute.xlu0 %1470 }
 0x485   : > { %v1466_v2 = vpop.permute.xlu1 %1465  ;;  %v1673_v29 = vmul.f32 %v1672_v49, %v3257_v8  ;;  %v1578_v31 = vmul.f32 2.1237322e-06, %v3266_v1  ;;  %v1500_v50 = vmul.f32 %v1471_v10, %v2944_v34 }
 0x486   : > { %v1535_v16 = vrot.slane %v1534_v58, 2  ;;  %v3269_v26 = vmul.f32 0.70710677, %v3261_v54  ;;  %v1499_v37 = vmul.f32 %v1466_v2, %v2934_v24  ;;  %v1590_v27 = vadd.f32 0.001143296, %v1589_v23 }
 0x487   : > { %v1621_v24 = vadd.f32 0.0036580483, %v1620_v45  ;;  %v3297_v52 = vadd.f32 1.0, %v1637_v63  ;;  %v1674_v53 = vadd.f32 0.112945676, %v1673_v29 }
 0x488   : > { %v1536_v13 = vadd.f32 %v1535_v16, %v1534_v58  ;;  %v1696_v5 = vmul.f32 %v3269_v26, %v3269_v26  ;;  %v1539_v60 = vadd.f32 %v1499_v37, %v1498_v41  ;;  %v1591_v51 = vmul.f32 %v1590_v27, %v3266_v1 }
 0x489   : > { %v1622_v9 = vmul.f32 %v1621_v24, %v3237_v55  ;;  %v1661_v16 = vadd.f32 0.0036580483, %v1660_v11  ;;  %v1579_v47 = vadd.f32 0.00028619796, %v1578_v31  ;;  %2411 = vrcp.f32 %v3297_v52 }
 0x48a   : > { %v3274_v17 = vmin.f32 %v1696_v5, 16.0  ;;  %v1537_v21 = vrot.slane %v1536_v13, 1  ;;  %v1540_v15 = vrot.slane %v1539_v60, 4  ;;  %v1592_v62 = vadd.f32 0.014752088, %v1591_v51 }
 0x48b   : > { %v1623_v4 = vadd.f32 0.05243302, %v1622_v9  ;;  %v1675_v32 = vmul.f32 %v1674_v53, %v3257_v8  ;;  %v1662_v6 = vmul.f32 %v1661_v16, %v3257_v8  ;;  %v1580_v34 = vmul.f32 %v1579_v47, %v3266_v1 }
 0x48c   : > { %v1709_v48 = vmul.f32 3.8918573e-05, %v3274_v17  ;;  %v3283_v56 = vadd.f32 %v1537_v21, %v1536_v13  ;;  %v1541_v19 = vadd.f32 %v1540_v15, %v1539_v60  ;;  %v1593_v43 = vmul.f32 %v1592_v62, %v3266_v1  ;;  %v1481_v28 = vpop.permute.xlu0 %1480 }
 0x48d   : > { %v1476_v3 = vpop.permute.xlu1 %1475  ;;  %v1676_v40 = vadd.f32 0.4994258, %v1675_v32  ;;  %v1663_v39 = vadd.f32 0.05243302, %v1662_v6  ;;  %v1581_v49 = vadd.f32 0.0036580483, %v1580_v34  ;;  %vm1644_vm9 = vweird.f32 %v3297_v52 }
 0x48e   : > { %v1710_v61 = vadd.f32 0.001143296, %v1709_v48  ;;  %v3287_v0 = vmul.f32 0.70710677, %v3283_v56  ;;  %v1501_v42 = vmul.f32 %v1476_v3, %v2954_v44  ;;  %v1542_v12 = vrot.slane %v1541_v19, 2 }
 0x48f   : > { %v1624_v44 = vmul.f32 %v1623_v4, %v3237_v55  ;;  %v1594_v20 = vadd.f32 0.112945676, %v1593_v43  ;;  %v3313_v48 = vpop.eup %2411  ;;  %v1698_v24 = vmul.f32 2.1237322e-06, %v3274_v17  ;;  %v1664_v31 = vmul.f32 %v1663_v39, %v3257_v8 }
 0x490   : > { %v1711_v36 = vmul.f32 %v1710_v61, %v3274_v17  ;;  %v1736_v46 = vmul.f32 %v3287_v0, %v3287_v0  ;;  %v1546_v2 = vadd.f32 %v1501_v42, %v1500_v50  ;;  %v1543_v37 = vadd.f32 %v1542_v12, %v1541_v19 }
 0x491   : > { %v1625_v41 = vadd.f32 0.18741608, %v1624_v44  ;;  %v1595_v45 = vmul.f32 %v1594_v20, %v3266_v1  ;;  %v1677_v61 = vmul.f32 %v1676_v40, %v3257_v8  ;;  %v1640_v63 = vmul.f32 %v3313_v48, %v3297_v52 }
 0x492   : > { %v1712_v58 = vadd.f32 0.014752088, %v1711_v36  ;;  %v3301_v25 = vmin.f32 %v1736_v46, 16.0  ;;  %v1547_v21 = vrot.slane %v1546_v2, 4  ;;  %v1544_v60 = vrot.slane %v1543_v37, 1 }
 0x493   : > { %v1626_v15 = vmul.f32 %v1625_v41, %v3237_v55  ;;  %v1596_v29 = vadd.f32 0.4994258, %v1595_v45  ;;  %v1582_v46 = vmul.f32 %v1581_v49, %v3266_v1  ;;  %v1699_v10 = vadd.f32 0.00028619796, %v1698_v24 }
 0x494   : > { %v1749_v13 = vmul.f32 3.8918573e-05, %v3301_v25  ;;  %v1713_v23 = vmul.f32 %v1712_v58, %v3274_v17  ;;  %v1548_v51 = vadd.f32 %v1547_v21, %v1546_v2  ;;  %v3322_v3 = vadd.f32 %v1544_v60, %v1543_v37 }
 0x495   : > { %v1486_v62 = vpop.permute.xlu1 %1485  ;;  %v1502_v19 = vmul.f32 %v1481_v28, %v2966_v59  ;;  %v3327_v55 = vadd.f32 1.0, %v1677_v61  ;;  %v1627_v43 = vadd.f32 1.1283791, %v1626_v15  ;;  %v1641_v58 = vsub.f32 1.0, %v1640_v63 }
 0x496   : > { %v1750_v5 = vadd.f32 0.001143296, %v1749_v13  ;;  %v1714_v27 = vadd.f32 0.112945676, %v1713_v23  ;;  %v1549_v11 = vrot.slane %v1548_v51, 2  ;;  %v1503_v4 = vmul.f32 %v1486_v62, %v2976_v7 }
 0x497   : > { %v3330_v53 = vmul.f32 0.70710677, %v3322_v3  ;;  %v1597_v50 = vmul.f32 %v1596_v29, %v3266_v1  ;;  %v1648_v59 = vand.u32 2147483647, %v3297_v52  ;;  %v1665_v2 = vadd.f32 0.18741608, %v1664_v31 }
 0x498   : > { %v1751_v30 = vmul.f32 %v1750_v5, %v3301_v25  ;;  %v1715_v9 = vmul.f32 %v1714_v27, %v3274_v17  ;;  %v1550_v42 = vadd.f32 %v1549_v11, %v1548_v51  ;;  %v1553_v13 = vadd.f32 %v1503_v4, %v1502_v19 }
 0x499   : > { %v1776_v12 = vmul.f32 %v3330_v53, %v3330_v53  ;;  %v1583_v44 = vadd.f32 0.05243302, %v1582_v46  ;;  %v1700_v20 = vmul.f32 %v1699_v10, %v3274_v17  ;;  %2413 = vrcp.f32 %v3327_v55 }
 0x49a   : > { %v1752_v35 = vadd.f32 0.014752088, %v1751_v30  ;;  %v1716_v16 = vadd.f32 0.4994258, %v1715_v9  ;;  %v1551_v32 = vrot.slane %v1550_v42, 1  ;;  %v3345_v6 = vmul.f32 %v1627_v43, %v3232_v57 }
 0x49b   : > { %v1738_v7 = vmul.f32 2.1237322e-06, %v3301_v25  ;;  %v3340_v23 = vmin.f32 %v1776_v12, 16.0  ;;  %v1650_v34 = vand.u32 2147483648, %v3297_v52  ;;  %v1554_v40 = vrot.slane %v1553_v13, 4 }
 0x49c   : > { %v1753_v36 = vmul.f32 %v1752_v35, %v3301_v25  ;;  %v3342_v5 = vadd.f32 %v1551_v32, %v1550_v42  ;;  %v1717_v37 = vmul.f32 %v1716_v16, %v3274_v17  ;;  %v1642_v30 = vmul.f32 %v3313_v48, %v1641_v58 }
 0x49d   : > { %v3350_v21 = vadd.f32 1.0, %v1597_v50  ;;  %v1789_v45 = vmul.f32 3.8918573e-05, %v3340_v23  ;;  %v1666_v27 = vmul.f32 %v1665_v2, %v3257_v8  ;;  %v1701_v35 = vadd.f32 0.0036580483, %v1700_v20 }
 0x49e   : > { %v1754_v47 = vadd.f32 0.112945676, %v1753_v36  ;;  %v3357_v57 = vmul.f32 0.70710677, %v3342_v5  ;;  %vm3359_vm10 = vcmp.eq.f32.partialorder %v1648_v59, 8.507059e+37  ;;  %v1584_v39 = vmul.f32 %v1583_v44, %v3266_v1 }
 0x49f   : > { %v1739_v49 = vadd.f32 0.00028619796, %v1738_v7  ;;  %v1790_v24 = vadd.f32 0.001143296, %v1789_v45  ;;  %v1651_v51 = vor.u32 1.1754944e-38, %v1650_v34  ;;  %v3364_v61 = vadd.f32 1.0, %v1717_v37  ;;  %v3368_v8 = vpop.eup %2413 }
 0x4a0   : > { %v1755_v41 = vmul.f32 %v1754_v47, %v3301_v25  ;;  %v1816_v28 = vmul.f32 %v3357_v57, %v3357_v57  ;;  %v1555_v15 = vadd.f32 %v1554_v40, %v1553_v13  ;;  %v1643_v63 = vadd.f32 %v3313_v48, %v1642_v30 }
 0x4a1   : > { %vm1645_vm11 = vweird.f32 %v3313_v48  ;;  %2415 = vrcp.f32 %v3350_v21  ;;  %v1667_v9 = vadd.f32 1.1283791, %v1666_v27  ;;  %v1702_v62 = vmul.f32 %v1701_v35, %v3274_v17 }
 0x4a2   : > { %v1756_v29 = vadd.f32 0.4994258, %v1755_v41  ;;  %v1778_v36 = vmul.f32 2.1237322e-06, %v3340_v23  ;;  %v1791_v11 = vmul.f32 %v1790_v24, %v3340_v23  ;;  %v1690_v31 = vand.u32 2147483648, %v3327_v55  ;;  %vm3382_vm12 = vmor %vm1644_vm9, %vm1645_vm11 }
 0x4a3   : > { %v1585_v46 = vadd.f32 0.18741608, %v1584_v39  ;;  %v1740_v10 = vmul.f32 %v1739_v49, %v3301_v25  ;;  %v3378_v19 = vmin.f32 %v1816_v28, 16.0  ;;  %v1680_v4 = vmul.f32 %v3368_v8, %v3327_v55 }
 0x4a4   : > { %2417 = vrcp.f32 %v3364_v61  ;;  %v1792_v43 = vadd.f32 0.014752088, %v1791_v11  ;;  %v1556_v58 = vrot.slane %v1555_v15, 2  ;;  %v1647_v50 = vsel %vm3382_vm12, %v3313_v48, %v1643_v63 }
 0x4a5   : > { %v1757_v16 = vmul.f32 %v1756_v29, %v3301_v25  ;;  %v1818_v47 = vmul.f32 2.1237322e-06, %v3378_v19  ;;  %v1829_v52 = vmul.f32 3.8918573e-05, %v3378_v19  ;;  %v1703_v12 = vadd.f32 0.05243302, %v1702_v62 }
 0x4a6   : > { %v1779_v32 = vadd.f32 0.00028619796, %v1778_v36  ;;  %v1793_v13 = vmul.f32 %v1792_v43, %v3340_v23  ;;  %v1557_v59 = vadd.f32 %v1556_v58, %v1555_v15  ;;  %v3399_v44 = vmul.f32 %v1667_v9, %v3245_v22 }
 0x4a7   : > { %v3396_v2 = vpop.eup %2415  ;;  %v1688_v20 = vand.u32 2147483647, %v3327_v55  ;;  %v1741_v7 = vadd.f32 0.0036580483, %v1740_v10  ;;  %v1830_v48 = vadd.f32 0.001143296, %v1829_v52  ;;  %v1652_v34 = vsel %vm3359_vm10, %v1651_v51, %v1647_v50 }
 0x4a8   : > { %v1681_v37 = vsub.f32 1.0, %v1680_v4  ;;  %v1586_v40 = vmul.f32 %v1585_v46, %v3266_v1  ;;  %v1819_v30 = vadd.f32 0.00028619796, %v1818_v47  ;;  %v3405_v41 = vadd.f32 1.0, %v1757_v16 }
 0x4a9   : > { %v1794_v45 = vadd.f32 0.112945676, %v1793_v13  ;;  %v1558_v27 = vrot.slane %v1557_v59, 1  ;;  %v1831_v35 = vmul.f32 %v1830_v48, %v3378_v19  ;;  %vm1684_vm13 = vweird.f32 %v3327_v55 }
 0x4aa   : > { %v3408_v39 = vpop.eup %2417  ;;  %v3411_v22 = vor.u32 1.1754944e-38, %v1690_v31  ;;  %v1600_v60 = vmul.f32 %v3396_v2, %v3350_v21  ;;  %v1704_v49 = vmul.f32 %v1703_v12, %v3274_v17  ;;  %v1780_v1 = vmul.f32 %v1779_v32, %v3340_v23 }
 0x4ab   : > { %v1742_v24 = vmul.f32 %v1741_v7, %v3301_v25  ;;  %v1795_v51 = vmul.f32 %v1794_v45, %v3340_v23  ;;  %v3419_v28 = vadd.f32 %v1558_v27, %v1557_v59  ;;  %v1832_v15 = vadd.f32 0.014752088, %v1831_v35 }
 0x4ac   : > { %v3422_v63 = vmul.f32 %v1652_v34, %v3345_v6  ;;  %v1682_v29 = vmul.f32 %v3368_v8, %v1681_v37  ;;  %v1587_v9 = vadd.f32 1.1283791, %v1586_v40  ;;  %v1820_v62 = vmul.f32 %v1819_v30, %v3378_v19 }
 0x4ad   : > { %v1720_v36 = vmul.f32 %v3408_v39, %v3364_v61  ;;  %2419 = vrcp.f32 %v3405_v41  ;;  %v1796_v11 = vadd.f32 0.4994258, %v1795_v51  ;;  %v3430_v31 = vmul.f32 0.70710677, %v3419_v28 }
 0x4ae   : > { %vm1685_vm14 = vweird.f32 %v3368_v8  ;;  %v1705_v46 = vadd.f32 0.18741608, %v1704_v49  ;;  %v1781_v10 = vadd.f32 0.0036580483, %v1780_v1  ;;  %v1833_v6 = vmul.f32 %v1832_v15, %v3378_v19 }
 0x4af   : > { %v1601_v42 = vsub.f32 1.0, %v1600_v60  ;;  %v1743_v4 = vadd.f32 0.05243302, %v1742_v24  ;;  %v1797_v43 = vmul.f32 %v1796_v11, %v3340_v23  ;;  %v1856_v58 = vmul.f32 %v3430_v31, %v3430_v31  ;;  %vm3456_vm15 = vmor %vm1684_vm13, %vm1685_vm14 }
 0x4b0   : > { %v1683_v50 = vadd.f32 %v3368_v8, %v1682_v29  ;;  %v3439_v16 = vmul.f32 %v1587_v9, %v3255_v14  ;;  %v1821_v47 = vadd.f32 0.0036580483, %v1820_v62  ;;  %v1834_v52 = vadd.f32 0.112945676, %v1833_v6 }
 0x4b1   : > { %v2230_v12 = vclamps-f32 %v3422_v63, 1.0  ;;  %v1721_v32 = vsub.f32 1.0, %v1720_v36  ;;  %v3442_v13 = vadd.f32 1.0, %v1797_v43  ;;  %v3444_v59 = vmin.f32 %v1856_v58, 16.0 }
 0x4b2   : > { %v1608_v7 = vand.u32 2147483647, %v3350_v21  ;;  %v1706_v48 = vmul.f32 %v1705_v46, %v3274_v17  ;;  %v1782_v34 = vmul.f32 %v1781_v10, %v3340_v23  ;;  %v1835_v37 = vmul.f32 %v1834_v52, %v3378_v19 }
 0x4b3   : > { %v3450_v40 = vpop.eup %2419  ;;  %v1602_v30 = vmul.f32 %v3396_v2, %v1601_v42  ;;  %vm1604_vm0 = vweird.f32 %v3350_v21  ;;  %v1744_v17 = vmul.f32 %v1743_v4, %v3301_v25  ;;  %2421 = vrcp.f32 %v3442_v13 }
 0x4b4   : > { %v1687_v45 = vsel %vm3456_vm15, %v3368_v8, %v1683_v50  ;;  %vm3467_vm8 = vcmp.eq.f32.partialorder %v1688_v20, 8.507059e+37  ;;  %v1610_v55 = vand.u32 2147483648, %v3350_v21  ;;  %v1822_v35 = vmul.f32 %v1821_v47, %v3378_v19 }
 0x4b5   : > { %v1836_v60 = vadd.f32 0.4994258, %v1835_v37  ;;  %vm1605_vm9 = vweird.f32 %v3396_v2  ;;  %v1722_v49 = vmul.f32 %v3408_v39, %v1721_v32  ;;  %v1858_v1 = vmul.f32 2.1237322e-06, %v3444_v59 }
 0x4b6   : > { %v1869_v24 = vmul.f32 3.8918573e-05, %v3444_v59  ;;  %vm3477_vm10 = vcmp.eq.f32.partialorder %v1608_v7, 8.507059e+37  ;;  %v1707_v8 = vadd.f32 1.1283791, %v1706_v48  ;;  %v1760_v20 = vmul.f32 %v3450_v40, %v3405_v41  ;;  %vm3498_vm12 = vmor %vm1604_vm0, %vm1605_vm9 }
 0x4b7   : > { %v1783_v15 = vadd.f32 0.05243302, %v1782_v34  ;;  %v1837_v29 = vmul.f32 %v1836_v60, %v3378_v19  ;;  %v1603_v9 = vadd.f32 %v3396_v2, %v1602_v30  ;;  %v1745_v62 = vadd.f32 0.18741608, %v1744_v17 }
 0x4b8   : > { %v1859_v36 = vadd.f32 0.00028619796, %v1858_v1  ;;  %v1870_v11 = vadd.f32 0.001143296, %v1869_v24  ;;  %v1611_v46 = vor.u32 1.1754944e-38, %v1610_v55  ;;  %v1723_v43 = vadd.f32 %v3408_v39, %v1722_v49 }
 0x4b9   : > { %v1728_v10 = vand.u32 2147483647, %v3364_v61  ;;  %v1823_v6 = vadd.f32 0.05243302, %v1822_v35  ;;  %v3486_v42 = vadd.f32 1.0, %v1837_v29  ;;  %v3488_v4 = vpop.eup %2421  ;;  %vm1725_vm11 = vweird.f32 %v3408_v39 }
 0x4ba   : > { %v1860_v58 = vmul.f32 %v1859_v36, %v3444_v59  ;;  %v1871_v50 = vmul.f32 %v1870_v11, %v3444_v59  ;;  %v1761_v52 = vsub.f32 1.0, %v1760_v20  ;;  %v1784_v32 = vmul.f32 %v1783_v15, %v3340_v23 }
 0x4bb   : > { %v1800_v7 = vmul.f32 %v3488_v4, %v3442_v13  ;;  %2423 = vrcp.f32 %v3486_v42  ;;  %v1607_v48 = vsel %vm3498_vm12, %v3396_v2, %v1603_v9  ;;  %vm1724_vm13 = vweird.f32 %v3364_v61 }
 0x4bc   : > { %v1730_v21 = vand.u32 2147483648, %v3364_v61  ;;  %v1746_v34 = vmul.f32 %v1745_v62, %v3301_v25  ;;  %v1824_v14 = vmul.f32 %v1823_v6, %v3378_v19  ;;  %v1861_v30 = vadd.f32 0.0036580483, %v1860_v58  ;;  %vm3521_vm14 = vmor %vm1724_vm13, %vm1725_vm11 }
 0x4bd   : > { %v1801_v37 = vsub.f32 1.0, %v1800_v7  ;;  %v1872_v17 = vadd.f32 0.014752088, %v1871_v50  ;;  %v3516_v55 = vsel %vm3467_vm8, %v3411_v22, %v1687_v45  ;;  %v1708_v35 = vmul.f32 %v1707_v8, %v3269_v26 }
 0x4be   : > { %vm1729_vm15 = vcmp.eq.f32.partialorder %v1728_v10, 8.507059e+37  ;;  %v1768_v25 = vand.u32 2147483647, %v3405_v41  ;;  %v1727_v61 = vsel %vm3521_vm14, %v3408_v39, %v1723_v43  ;;  %v1762_v60 = vmul.f32 %v3450_v40, %v1761_v52 }
 0x4bf   : > { %v1785_v27 = vadd.f32 0.18741608, %v1784_v32  ;;  %v1873_v22 = vmul.f32 %v1872_v17, %v3444_v59  ;;  %v1612_v26 = vsel %vm3477_vm10, %v1611_v46, %v1607_v48  ;;  %v1731_v45 = vor.u32 1.1754944e-38, %v1730_v21 }
 0x4c0   : > { %v1747_v49 = vadd.f32 1.1283791, %v1746_v34  ;;  %v1802_v1 = vmul.f32 %v3488_v4, %v1801_v37  ;;  %vm1764_vm0 = vweird.f32 %v3405_v41  ;;  %v1825_v8 = vadd.f32 0.18741608, %v1824_v14 }
 0x4c1   : > { %v2424_v24 = vpop.eup %2423  ;;  %v1862_v20 = vmul.f32 %v1861_v30, %v3444_v59  ;;  %v1874_v15 = vadd.f32 0.112945676, %v1873_v22  ;;  %v1732_v39 = vsel %vm1729_vm15, %v1731_v45, %v1727_v61  ;;  %vm3536_vm8 = vcmp.eq.f32.partialorder %v1768_v25, 8.507059e+37 }
 0x4c2   : > { %v1770_v9 = vand.u32 2147483648, %v3405_v41  ;;  %v1840_v51 = vmul.f32 %v2424_v24, %v3486_v42  ;;  %v1763_v62 = vadd.f32 %v3450_v40, %v1762_v60  ;;  %vm1765_vm9 = vweird.f32 %v3450_v40 }
 0x4c3   : > { %v1786_v36 = vmul.f32 %v1785_v27, %v3340_v23  ;;  %v1875_v11 = vmul.f32 %v1874_v15, %v3444_v59  ;;  %v1803_v46 = vadd.f32 %v3488_v4, %v1802_v1  ;;  %vm1804_vm10 = vweird.f32 %v3442_v13  ;;  %vm3553_vm12 = vmor %vm1764_vm0, %vm1765_vm9 }
 0x4c4   : > { %vm1805_vm11 = vweird.f32 %v3488_v4  ;;  %v1841_v10 = vsub.f32 1.0, %v1840_v51  ;;  %v1810_v6 = vand.u32 2147483648, %v3442_v13  ;;  %v1826_v43 = vmul.f32 %v1825_v8, %v3378_v19 }
 0x4c5   : > { %v1863_v58 = vadd.f32 0.05243302, %v1862_v20  ;;  %v1876_v50 = vadd.f32 0.4994258, %v1875_v11  ;;  %v1808_v23 = vand.u32 2147483647, %v3442_v13  ;;  %vm1845_vm13 = vweird.f32 %v2424_v24  ;;  %vm3562_vm14 = vmor %vm1804_vm10, %vm1805_vm11 }
 0x4c6   : > { %v1842_v52 = vmul.f32 %v2424_v24, %v1841_v10  ;;  %v1850_v32 = vand.u32 2147483648, %v3486_v42  ;;  %v1767_v7 = vsel %vm3553_vm12, %v3450_v40, %v1763_v62  ;;  %v1771_v48 = vor.u32 1.1754944e-38, %v1770_v9 }
 0x4c7   : > { %v1848_v41 = vand.u32 2147483647, %v3486_v42  ;;  %v1877_v21 = vmul.f32 %v1876_v50, %v3444_v59  ;;  %v1787_v34 = vadd.f32 1.1283791, %v1786_v36  ;;  %v1807_v13 = vsel %vm3562_vm14, %v3488_v4, %v1803_v46 }
 0x4c8   : > { %v1843_v37 = vadd.f32 %v2424_v24, %v1842_v52  ;;  %vm1844_vm15 = vweird.f32 %v3486_v42  ;;  %v1811_v14 = vor.u32 1.1754944e-38, %v1810_v6  ;;  %v1827_v30 = vadd.f32 1.1283791, %v1826_v43 }
 0x4c9   : > { %vm1846_vm0 = vmor %vm1844_vm15, %vm1845_vm13  ;;  %v1864_v40 = vmul.f32 %v1863_v58, %v3444_v59  ;;  %v1878_v17 = vadd.f32 1.0, %v1877_v21  ;;  %v1772_v2 = vsel %vm3536_vm8, %v1771_v48, %v1767_v7  ;;  %vm1809_vm9 = vcmp.eq.f32.partialorder %v1808_v23, 8.507059e+37 }
 0x4ca   : > { %v1847_v25 = vsel %vm1846_vm0, %v2424_v24, %v1843_v37  ;;  %v1851_v61 = vor.u32 1.1754944e-38, %v1850_v32  ;;  %v1748_v60 = vmul.f32 %v1747_v49, %v3287_v0  ;;  %v1812_v27 = vsel %vm1809_vm9, %v1811_v14, %v1807_v13 }
 0x4cb   : > { %vm1849_vm10 = vcmp.eq.f32.partialorder %v1848_v41, 8.507059e+37  ;;  %2425 = vrcp.f32 %v1878_v17  ;;  %v1613_v4 = vmul.f32 %v1612_v26, %v3439_v16  ;;  %v1733_v42 = vmul.f32 %v1732_v39, %v1708_v35 }
 0x4cc   : > { %v1788_v22 = vmul.f32 %v1787_v34, %v3330_v53  ;;  %v1852_v45 = vsel %vm1849_vm10, %v1851_v61, %v1847_v25  ;;  %v1693_v1 = vmul.f32 %v3516_v55, %v3399_v44  ;;  %v1773_v8 = vmul.f32 %v1772_v2, %v1748_v60 }
 0x4cd   : > { %v1828_v20 = vmul.f32 %v1827_v30, %v3357_v57  ;;  %v1865_v15 = vadd.f32 0.18741608, %v1864_v40  ;;  %v1897_v0 = vadd.f32 1.0, %v2230_v12  ;;  %v2229_v29 = vclamps-f32 %v1613_v4, 1.0  ;;  %v2376_v57 = vld [vmem:[%s3629_s8] ss:$0 sm:$0xff] }
 0x4ce   : > { %v1813_v24 = vmul.f32 %v1812_v27, %v1788_v22  ;;  %v2232_v9 = vclamps-f32 %v1733_v42, 1.0  ;;  %v1561_v16 = vmul.f32 0.5, %v3228_v33  ;;  %v2231_v35 = vclamps-f32 %v1693_v1, 1.0 }
 0x4cf   : > { %v1853_v49 = vmul.f32 %v1852_v45, %v1828_v20  ;;  %v2233_v53 = vclamps-f32 %v1773_v8, 1.0  ;;  %v1866_v26 = vmul.f32 %v1865_v15, %v3444_v59  ;;  %v1562_v63 = vmul.f32 0.5, %v3241_v38 }
 0x4d0   : > { %v2234_v39 = vclamps-f32 %v1813_v24, 1.0  ;;  %v1905_v55 = vmul.f32 %v1897_v0, %v1561_v16  ;;  %v1560_v12 = vmul.f32 0.5, %v3247_v18  ;;  %v1896_v36 = vadd.f32 1.0, %v2229_v29 }
 0x4d1   : > { %v2426_v51 = vpop.eup %2425  ;;  %v2235_v62 = vclamps-f32 %v1853_v49, 1.0  ;;  %v1563_v11 = vmul.f32 0.5, %v3261_v54  ;;  %v1899_v33 = vadd.f32 1.0, %v2232_v9  ;;  %v1898_v10 = vadd.f32 1.0, %v2231_v35 }
 0x4d2   : > { %v1880_v44 = vmul.f32 %v2426_v51, %v1878_v17  ;;  %v1900_v6 = vadd.f32 1.0, %v2233_v53  ;;  %v1867_v59 = vadd.f32 1.1283791, %v1866_v26  ;;  %v1890_v43 = vand.u32 2147483648, %v1878_v17 }
 0x4d3   : > { %vm1885_vm8 = vweird.f32 %v2426_v51  ;;  %v1888_v50 = vand.u32 2147483647, %v1878_v17  ;;  %v1901_v47 = vadd.f32 1.0, %v2234_v39  ;;  %v1916_v23 = vmul.f32 %v2376_v57, %v1905_v55 }
 0x4d4   : > { %v1881_v46 = vsub.f32 1.0, %v1880_v44  ;;  %v1564_v52 = vmul.f32 0.5, %v3283_v56  ;;  %v1565_v38 = vmul.f32 0.5, %v3322_v3  ;;  %v1902_v18 = vadd.f32 1.0, %v2235_v62 }
 0x4d5   : > { %v1904_v32 = vmul.f32 %v1896_v36, %v1560_v12  ;;  %v1907_v7 = vmul.f32 %v1899_v33, %v1563_v11  ;;  %vm1884_vm11 = vweird.f32 %v1878_v17  ;;  %v1906_v54 = vmul.f32 %v1898_v10, %v1562_v63 }
 0x4d6   : > { %v1882_v58 = vmul.f32 %v2426_v51, %v1881_v46  ;;  %v1908_v19 = vmul.f32 %v1900_v6, %v1564_v52  ;;  %v1566_v41 = vmul.f32 0.5, %v3342_v5  ;;  %vm1886_vm12 = vmor %vm1884_vm11, %vm1885_vm8  ;;  %v1891_v21 = vor.u32 1.1754944e-38, %v1890_v43 }
 0x4d7   : > { %v1868_v34 = vmul.f32 %v1867_v59, %v3430_v31  ;;  %vm1889_vm13 = vcmp.eq.f32.partialorder %v1888_v50, 8.507059e+37  ;;  %v1909_v37 = vmul.f32 %v1901_v47, %v1565_v38  ;;  %v1915_v30 = vmul.f32 %v2376_v57, %v1904_v32 }
 0x4d8   : > { %v1883_v48 = vadd.f32 %v2426_v51, %v1882_v58  ;;  %v1910_v56 = vmul.f32 %v1902_v18, %v1566_v41  ;;  %v1918_v40 = vmul.f32 %v2376_v57, %v1907_v7  ;;  %v1917_v2 = vmul.f32 %v2376_v57, %v1906_v54 }
 0x4d9   : > { %v1919_v25 = vmul.f32 %v2376_v57, %v1908_v19  ;;  %v1931_v61 = vrot.slane %v1916_v23, 7  ;;  %v1920_v60 = vmul.f32 %v2376_v57, %v1909_v37  ;;  %v1567_v5 = vmul.f32 0.5, %v3419_v28 }
 0x4da   : > { %v1887_v13 = vsel %vm1886_vm12, %v2426_v51, %v1883_v48  ;;  %v1921_v27 = vmul.f32 %v2376_v57, %v1910_v56  ;;  %v1935_v31 = vrot.slane %v1918_v40, 5  ;;  %v1933_v22 = vrot.slane %v1917_v2, 6 }
 0x4db   : > { %v1892_v14 = vsel %vm1889_vm13, %v1891_v21, %v1887_v13  ;;  %v1932_v42 = vsel %vm1191_vm1, %v1931_v61, %v1915_v30  ;;  %v1937_v45 = vrot.slane %v1919_v25, 4  ;;  %v1939_v8 = vrot.slane %v1920_v60, 3 }
 0x4dc   : > { %v1893_v3 = vmul.f32 %v1892_v14, %v1868_v34  ;;  %v1934_v20 = vsel %vm1193_vm2, %v1933_v22, %v1932_v42  ;;  %v1941_v15 = vrot.slane %v1921_v27, 2  ;;  %v1948_v16 = vstv %s566_s30 }
 0x4dd   : > { %v1936_v0 = vsel %vm1195_vm3, %v1935_v31, %v1934_v20  ;;  %vm1950_vm1 = vcmask 7168  }
 0x4de   : > { %v2236_v17 = vclamps-f32 %v1893_v3, 1.0  ;;  %v1938_v49 = vsel %vm1197_vm4, %v1937_v45, %v1936_v0 }
 0x4df   : > { %v1940_v28 = vsel %vm1199_vm5, %v1939_v8, %v1938_v49 }
 0x4e0   : > { %v1903_v4 = vadd.f32 1.0, %v2236_v17  ;;  %v1942_v9 = vsel %vm1201_vm6, %v1941_v15, %v1940_v28 }
 0x4e2   : > { %v1911_v1 = vmul.f32 %v1903_v4, %v1567_v5 }
 0x4e4   : > { %v1922_v24 = vmul.f32 %v2376_v57, %v1911_v1 }
 0x4e6   : > { %v1943_v29 = vrot.slane %v1922_v24, 1 }
 0x4e8   : > { %v1944_v51 = vsel %vm1203_vm7, %v1943_v29, %v1942_v9 }
 0x4e9   : > { %1946 = vadd.xlane.f32.xlu0 %v1944_v51 }
 0x55c   : > { %v1947_v35 = vpop.xlane.xlu0 %1946 }
 0x55d   : > { %v1949_v53 = vadd.f32 %v1948_v16, %v1947_v35 }
 0x55f   : > { %1951 = vst.msk [vmem:[%s496_s21] sm:$0xff] %vm1950_vm1, %v1949_v53 }
 0x560 PF: > { %s3675_s26 = sld [smem:[#allocation15_spill]]  ;;  %p26_p4 = scmp.ge.s32.totalorder %s2734_s28, 4  }
 0x561   : > { %s3676_s19 = sld [smem:[#allocation16_spill]]  ;;  %s3677_s17 = smov %s2611_s18 }
 0x562   : > { %s3679_s20 = smov %s2734_s28  ;;  %28 = sbr.rel (!%p26_p4) target bundleno = 12 (0xc), region = 132 }
 0x566   : > { %s3678_s18 = smov %s3675_s26 }
 0x567   :  { %1971 = vsyncpa [#allocation5], 1 }
 0x568   :  { %1973 = vsyncpa [#allocation5 + $0x1], 1 }
 0x569   :  { %1974 = vsyncpa [#allocation7], 1 }
 0x56a   :  { %1976 = vsyncpa [#allocation7 + $0x1], 1 }
 0x56b   :  { %1977 = vsyncpa [#allocation10], 1 }

</bundles_post_ra>
